<compile_context>
chip_gen: v5e
topology: v5e:2x2
jax: 0.10.0
libtpu: 0.0.40
codegen_flags: <defaults>
</compile_context>

<pallas_src>
import jax
import jax.numpy as jnp
from jax.experimental import pallas as pl
from jax.experimental.pallas import tpu as pltpu


def _dense_block_kernel(x_ref, scale_ref, bias_ref, w_ref, out_ref, pad_ref, col_ref):
    """One grid step = one (batch, row-tile) of the fused output.

    x_ref:     (1, H, W, Cin)          full image (resident across row tiles)
    scale_ref: (1, Cin)  f32           folded BN scale (gamma / sqrt(var + eps))
    bias_ref:  (1, Cin)  f32           folded BN bias  (beta - mean * scale)
    w_ref:     (9*Cin, Cout)           im2col conv weights (tap-major)
    out_ref:   (1, TH, W, Cin + Cout)  fused output tile: [x, conv(relu(bn(x)))]
    pad_ref:   (TH+2, W+2, Cin)        VMEM scratch: zero halo + BN/ReLU rows
    col_ref:   (TH*W, 9*Cin)           VMEM scratch: im2col patches
    """
    rt = pl.program_id(1)
    n_rt = pl.num_programs(1)

    W = x_ref.shape[2]
    Cin = x_ref.shape[3]
    TH = out_ref.shape[1]
    Ctot = out_ref.shape[3]
    Cout = Ctot - Cin

    r0 = pl.multiple_of(rt * TH, TH)          # first image row of this tile

    scale = scale_ref[0]                      # (Cin,) f32
    bias = bias_ref[0]                        # (Cin,) f32

    def bn_relu(v):
        v = v.astype(jnp.float32)
        y = jnp.maximum(v * scale[None, None, :] + bias[None, None, :], 0.0)
        return y.astype(pad_ref.dtype)

    # --- Build the padded activation tile (TH+2, W+2, Cin) -------------------------
    # Left / right 1-pixel column halo (always zero).
    zcol = jnp.zeros((TH + 2, 1, Cin), dtype=pad_ref.dtype)
    pad_ref[:, 0:1, :] = zcol
    pad_ref[:, W + 1:W + 2, :] = zcol

    # Interior rows: image rows r0 .. r0+TH-1 (BN + ReLU, stored straight in).
    x_tile = x_ref[0, pl.ds(r0, TH), :, :]                    # (TH, W, Cin)
    pad_ref[1:TH + 1, 1:W + 1, :] = bn_relu(x_tile)

    zrow = jnp.zeros((1, W, Cin), dtype=pad_ref.dtype)

    # Top halo row: image row r0-1, zero at the top image edge.
    @pl.when(rt == 0)
    def _():
        pad_ref[0:1, 1:W + 1, :] = zrow

    @pl.when(rt > 0)
    def _():
        top = x_ref[0, pl.ds(r0 - 1, 1), :, :]                # (1, W, Cin)
        pad_ref[0:1, 1:W + 1, :] = bn_relu(top)

    # Bottom halo row: image row r0+TH, zero at the bottom image edge.
    @pl.when(rt == n_rt - 1)
    def _():
        pad_ref[TH + 1:TH + 2, 1:W + 1, :] = zrow

    @pl.when(rt < n_rt - 1)
    def _():
        bot = x_ref[0, pl.ds(r0 + TH, 1), :, :]               # (1, W, Cin)
        pad_ref[TH + 1:TH + 2, 1:W + 1, :] = bn_relu(bot)

    # --- im2col: 9 shifted copies done exactly once into the col scratch -----------
    for dy in range(3):
        for dx in range(3):
            t = dy * 3 + dx
            col_ref[:, t * Cin:(t + 1) * Cin] = (
                pad_ref[dy:dy + TH, dx:dx + W, :].reshape(TH * W, Cin))

    # --- One MXU pass: (TH*W, 9*Cin) x (9*Cin, Cout), f32 accumulation -------------
    conv = jnp.dot(col_ref[...], w_ref[...], preferred_element_type=jnp.float32)
    conv = conv.reshape(TH, W, Cout)

    # --- Fused concat, single full-width store --------------------------------------
    out_ref[0] = jnp.concatenate(
        [x_tile.astype(out_ref.dtype), conv.astype(out_ref.dtype)], axis=-1)


def dense_basic_block_nhwc(x_nhwc, params, *, row_tile=None, vmem_limit_bytes=None):
    """Primary fused path: NHWC in -> NHWC out (channels = Cin + Cout), one pallas_call."""
    gamma, beta, run_mean, run_var, eps, w_oihw = (
        params["gamma"], params["beta"], params["running_mean"],
        params["running_var"], params["eps"], params["conv_w"])

    N, H, W, Cin = x_nhwc.shape
    Cout = w_oihw.shape[0]
    Ctot = Cin + Cout

    # Fold BN (inference semantics) into a per-channel f32 scale/bias.
    scale = (gamma.astype(jnp.float32)
             / jnp.sqrt(run_var.astype(jnp.float32) + eps))
    bias = beta.astype(jnp.float32) - run_mean.astype(jnp.float32) * scale

    # Compute dtype follows the activations (use bf16 inputs for the bandwidth-bound
    # regime; matmul still accumulates in f32 via preferred_element_type).
    cdtype = x_nhwc.dtype

    # Conv weight OIHW -> HWIO -> (9*Cin, Cout), tap-major to match the im2col layout.
    w_col = jnp.transpose(w_oihw, (2, 3, 1, 0)).reshape(9 * Cin, Cout).astype(cdtype)

    if row_tile is None:
        row_tile = H // 2 if (H % 2 == 0 and H >= 8) else H
    assert H % row_tile == 0, (H, row_tile)
    n_rt = H // row_tile
    TH = row_tile

    cp_kwargs = dict(dimension_semantics=("parallel", "parallel"))
    if vmem_limit_bytes is not None:
        cp_kwargs["vmem_limit_bytes"] = int(vmem_limit_bytes)

    return pl.pallas_call(
        _dense_block_kernel,
        out_shape=jax.ShapeDtypeStruct((N, H, W, Ctot), x_nhwc.dtype),
        grid_spec=pltpu.PrefetchScalarGridSpec(
            num_scalar_prefetch=0,
            grid=(N, n_rt),
            in_specs=[
                # Full image; block index only depends on n -> DMA'd once per image.
                pl.BlockSpec((1, H, W, Cin), lambda n, rt: (n, 0, 0, 0)),
                # Constant block index -> DMA'd once, not per grid step.
                pl.BlockSpec((1, Cin), lambda n, rt: (0, 0)),
                pl.BlockSpec((1, Cin), lambda n, rt: (0, 0)),
                pl.BlockSpec((9 * Cin, Cout), lambda n, rt: (0, 0)),
            ],
            out_specs=pl.BlockSpec((1, TH, W, Ctot), lambda n, rt: (n, rt, 0, 0)),
            scratch_shapes=[
                pltpu.VMEM((TH + 2, W + 2, Cin), cdtype),      # padded activation
                pltpu.VMEM((TH * W, 9 * Cin), cdtype),         # im2col patches
            ],
        ),
        compiler_params=pltpu.CompilerParams(**cp_kwargs),
    )(x_nhwc, scale.reshape(1, Cin), bias.reshape(1, Cin), w_col)


def dense_basic_block(x_nchw, params, **kwargs):
    """NCHW compatibility wrapper matching the PyTorch module's interface.

    x_nchw: (N, Cin, H, W) -> (N, Cin + Cout, H, W). Chained DenseNet blocks should
    prefer dense_basic_block_nhwc to avoid the boundary transposes.
    """
    x_nhwc = jnp.transpose(x_nchw, (0, 2, 3, 1))
    out_nhwc = dense_basic_block_nhwc(x_nhwc, params, **kwargs)
    return jnp.transpose(out_nhwc, (0, 3, 1, 2))


def _reference(x_nchw, params):
    """Pure-JAX reference (lax.conv) for correctness checking."""
    gamma, beta, run_mean, run_var, eps, w_oihw = (
        params["gamma"], params["beta"], params["running_mean"],
        params["running_var"], params["eps"], params["conv_w"])
    scale = (gamma / jnp.sqrt(run_var + eps))[None, :, None, None]
    bias = (beta - run_mean * gamma / jnp.sqrt(run_var + eps))[None, :, None, None]
    y = jnp.maximum(x_nchw * scale + bias, 0.0)
    out = jax.lax.conv_general_dilated(
        y, w_oihw, window_strides=(1, 1), padding=((1, 1), (1, 1)),
        dimension_numbers=("NCHW", "OIHW", "NCHW"))
    return jnp.concatenate((x_nchw, out), axis=1)


if __name__ == "__main__":
    key = jax.random.PRNGKey(0)
    k_x, k_g, k_b, k_m, k_v, k_w = jax.random.split(key, 6)

    N, Cin, H, W = 2, 4, 16, 16
    Cout = 8  # growth rate / outplanes

    x = jax.random.normal(k_x, (N, Cin, H, W), dtype=jnp.float32)

    params = {
        "gamma": 1.0 + 0.1 * jax.random.normal(k_g, (Cin,), dtype=jnp.float32),
        "beta": 0.1 * jax.random.normal(k_b, (Cin,), dtype=jnp.float32),
        "running_mean": 0.1 * jax.random.normal(k_m, (Cin,), dtype=jnp.float32),
        "running_var": 1.0 + 0.1 * jax.random.uniform(k_v, (Cin,), dtype=jnp.float32),
        "eps": 1e-5,
        # Conv2d weight, OIHW, kaiming-ish scale
        "conv_w": jax.random.normal(k_w, (Cout, Cin, 3, 3), dtype=jnp.float32)
                  * (2.0 / (Cin * 9)) ** 0.5,
    }

    ref = _reference(x, params)

    # NCHW interface (matches the PyTorch module), f32, row-tiled grid.
    out = jax.block_until_ready(dense_basic_block(x, params))
    assert out.shape == (N, Cin + Cout, H, W), out.shape
    assert jnp.allclose(out, ref, atol=1e-4, rtol=1e-4), \
        float(jnp.max(jnp.abs(out - ref)))

    # NHWC primary path (fused concat, no boundary transposes) also matches.
    out_nhwc = jax.block_until_ready(
        dense_basic_block_nhwc(jnp.transpose(x, (0, 2, 3, 1)), params))
    assert jnp.allclose(jnp.transpose(out_nhwc, (0, 3, 1, 2)), ref,
                        atol=1e-4, rtol=1e-4)

    # Single row tile per image (rt halo edge-cases) still matches.
    out_one = jax.block_until_ready(dense_basic_block(x, params, row_tile=H))
    assert jnp.allclose(out_one, ref, atol=1e-4, rtol=1e-4)

    # bf16 activation/weight path (f32 accumulation), loose tolerance.
    out_bf16 = jax.block_until_ready(
        dense_basic_block_nhwc(jnp.transpose(x, (0, 2, 3, 1)).astype(jnp.bfloat16),
                               params))
    assert jnp.allclose(
        jnp.transpose(out_bf16.astype(jnp.float32), (0, 3, 1, 2)), ref,
        atol=1e-1, rtol=1e-1)

    print("KERNEL_OK")
</pallas_src>

<mosaic_0001>
module attributes {stable_mosaic.version = 11 : i64} {
  func.func @_dense_block_kernel(%arg0: i32, %arg1: i32, %arg2: memref<1x16x16x4xf32, #tpu.memory_space<vmem>>, %arg3: memref<1x4xf32, #tpu.memory_space<vmem>>, %arg4: memref<1x4xf32, #tpu.memory_space<vmem>>, %arg5: memref<36x8xf32, #tpu.memory_space<vmem>>, %arg6: memref<1x8x16x12xf32, #tpu.memory_space<vmem>>, %arg7: memref<10x18x4xf32, #tpu.memory_space<vmem>>, %arg8: memref<128x36xf32, #tpu.memory_space<vmem>>) attributes {dimension_semantics = [#tpu.dimension_semantics<parallel>, #tpu.dimension_semantics<parallel>], iteration_bounds = array<i64: 2, 2>, scalar_prefetch = 0 : i64, scratch_operands = 2 : i64, tpu.core_type = #tpu.core_type<tc>, window_params = [{transform_indices = @transform_0, window_bounds = array<i64: 1, 16, 16, 4>}, {pipeline_mode = #tpu.pipeline_mode<synchronous>, transform_indices = @transform_1, window_bounds = array<i64: 1, 4>}, {pipeline_mode = #tpu.pipeline_mode<synchronous>, transform_indices = @transform_2, window_bounds = array<i64: 1, 4>}, {pipeline_mode = #tpu.pipeline_mode<synchronous>, transform_indices = @transform_3, window_bounds = array<i64: 36, 8>}, {transform_indices = @transform_4, window_bounds = array<i64: 1, 8, 16, 12>}]} {
    %c8_i32 = arith.constant 8 : i32
    %0 = arith.muli %arg1, %c8_i32 : i32
    %1 = tpu.assume_multiple %0, 8 : i32
    %c0 = arith.constant 0 : index
    %c0_0 = arith.constant 0 : index
    %2 = vector.load %arg3[%c0, %c0_0] : memref<1x4xf32, #tpu.memory_space<vmem>>, vector<1x4xf32>
    %3 = vector.shape_cast %2 : vector<1x4xf32> to vector<4xf32>
    %c0_1 = arith.constant 0 : index
    %c0_2 = arith.constant 0 : index
    %4 = vector.load %arg4[%c0_1, %c0_2] : memref<1x4xf32, #tpu.memory_space<vmem>>, vector<1x4xf32>
    %5 = vector.shape_cast %4 : vector<1x4xf32> to vector<4xf32>
    %cst = arith.constant 0.000000e+00 : f32
    %6 = vector.broadcast %cst : f32 to vector<10x1x4xf32>
    %c0_3 = arith.constant 0 : index
    %c0_4 = arith.constant 0 : index
    %c0_5 = arith.constant 0 : index
    %7 = vector.load %arg7[%c0_3, %c0_4, %c0_5] : memref<10x18x4xf32, #tpu.memory_space<vmem>>, vector<10x1x4xf32>
    tpu.vector_store %arg7[%c0_3, %c0_4, %c0_5], %6 {strides = array<i32>} : memref<10x18x4xf32, #tpu.memory_space<vmem>>, vector<10x1x4xf32>,
    %c0_6 = arith.constant 0 : index
    %c17 = arith.constant 17 : index
    %c0_7 = arith.constant 0 : index
    %8 = vector.load %arg7[%c0_6, %c17, %c0_7] : memref<10x18x4xf32, #tpu.memory_space<vmem>>, vector<10x1x4xf32>
    tpu.vector_store %arg7[%c0_6, %c17, %c0_7], %6 {strides = array<i32>} : memref<10x18x4xf32, #tpu.memory_space<vmem>>, vector<10x1x4xf32>,
    %c0_8 = arith.constant 0 : index
    %9 = arith.index_cast %1 : i32 to index
    %c0_9 = arith.constant 0 : index
    %c0_10 = arith.constant 0 : index
    %10 = vector.load %arg2[%c0_8, %9, %c0_9, %c0_10] : memref<1x16x16x4xf32, #tpu.memory_space<vmem>>, vector<1x8x16x4xf32>
    %11 = vector.shape_cast %10 : vector<1x8x16x4xf32> to vector<8x16x4xf32>
    %12 = vector.shape_cast %3 : vector<4xf32> to vector<1x1x4xf32>
    %13 = vector.broadcast %12 : vector<1x1x4xf32> to vector<8x16x4xf32>
    %14 = arith.mulf %11, %13 : vector<8x16x4xf32>
    %15 = vector.shape_cast %5 : vector<4xf32> to vector<1x1x4xf32>
    %16 = vector.broadcast %15 : vector<1x1x4xf32> to vector<8x16x4xf32>
    %17 = arith.addf %14, %16 : vector<8x16x4xf32>
    %cst_11 = arith.constant 0.000000e+00 : f32
    %18 = vector.broadcast %cst_11 : f32 to vector<8x16x4xf32>
    %19 = arith.maximumf %17, %18 : vector<8x16x4xf32>
    %c1 = arith.constant 1 : index
    %c1_12 = arith.constant 1 : index
    %c0_13 = arith.constant 0 : index
    %20 = vector.load %arg7[%c1, %c1_12, %c0_13] : memref<10x18x4xf32, #tpu.memory_space<vmem>>, vector<8x16x4xf32>
    tpu.vector_store %arg7[%c1, %c1_12, %c0_13], %19 {strides = array<i32>} : memref<10x18x4xf32, #tpu.memory_space<vmem>>, vector<8x16x4xf32>,
    %cst_14 = arith.constant 0.000000e+00 : f32
    %21 = vector.broadcast %cst_14 : f32 to vector<1x16x4xf32>
    %c0_i32 = arith.constant 0 : i32
    %22 = arith.cmpi eq, %arg1, %c0_i32 : i32
    %23 = arith.extui %22 : i1 to i32
    %c0_i32_15 = arith.constant 0 : i32
    %24 = arith.cmpi ne, %23, %c0_i32_15 : i32
    scf.if %24 {
      %c0_66 = arith.constant 0 : index
      %c1_67 = arith.constant 1 : index
      %c0_68 = arith.constant 0 : index
      %69 = vector.load %arg7[%c0_66, %c1_67, %c0_68] : memref<10x18x4xf32, #tpu.memory_space<vmem>>, vector<1x16x4xf32>
      tpu.vector_store %arg7[%c0_66, %c1_67, %c0_68], %21 {strides = array<i32>} : memref<10x18x4xf32, #tpu.memory_space<vmem>>, vector<1x16x4xf32>,
    } else {
    }
    %c0_i32_16 = arith.constant 0 : i32
    %25 = arith.cmpi sgt, %arg1, %c0_i32_16 : i32
    %26 = arith.extui %25 : i1 to i32
    %c0_i32_17 = arith.constant 0 : i32
    %27 = arith.cmpi ne, %26, %c0_i32_17 : i32
    scf.if %27 {
      %c1_i32_66 = arith.constant 1 : i32
      %69 = arith.subi %1, %c1_i32_66 : i32
      %c0_67 = arith.constant 0 : index
      %70 = arith.index_cast %69 : i32 to index
      %c0_68 = arith.constant 0 : index
      %c0_69 = arith.constant 0 : index
      %71 = vector.load %arg2[%c0_67, %70, %c0_68, %c0_69] : memref<1x16x16x4xf32, #tpu.memory_space<vmem>>, vector<1x1x16x4xf32>
      %72 = vector.shape_cast %71 : vector<1x1x16x4xf32> to vector<1x16x4xf32>
      %73 = vector.shape_cast %3 : vector<4xf32> to vector<1x1x4xf32>
      %74 = vector.broadcast %73 : vector<1x1x4xf32> to vector<1x16x4xf32>
      %75 = arith.mulf %72, %74 : vector<1x16x4xf32>
      %76 = vector.shape_cast %5 : vector<4xf32> to vector<1x1x4xf32>
      %77 = vector.broadcast %76 : vector<1x1x4xf32> to vector<1x16x4xf32>
      %78 = arith.addf %75, %77 : vector<1x16x4xf32>
      %cst_70 = arith.constant 0.000000e+00 : f32
      %79 = vector.broadcast %cst_70 : f32 to vector<1x16x4xf32>
      %80 = arith.maximumf %78, %79 : vector<1x16x4xf32>
      %c0_71 = arith.constant 0 : index
      %c1_72 = arith.constant 1 : index
      %c0_73 = arith.constant 0 : index
      %81 = vector.load %arg7[%c0_71, %c1_72, %c0_73] : memref<10x18x4xf32, #tpu.memory_space<vmem>>, vector<1x16x4xf32>
      tpu.vector_store %arg7[%c0_71, %c1_72, %c0_73], %80 {strides = array<i32>} : memref<10x18x4xf32, #tpu.memory_space<vmem>>, vector<1x16x4xf32>,
    } else {
    }
    %c1_i32 = arith.constant 1 : i32
    %28 = arith.cmpi eq, %arg1, %c1_i32 : i32
    %29 = arith.extui %28 : i1 to i32
    %c0_i32_18 = arith.constant 0 : i32
    %30 = arith.cmpi ne, %29, %c0_i32_18 : i32
    scf.if %30 {
      %c9 = arith.constant 9 : index
      %c1_66 = arith.constant 1 : index
      %c0_67 = arith.constant 0 : index
      %69 = vector.load %arg7[%c9, %c1_66, %c0_67] : memref<10x18x4xf32, #tpu.memory_space<vmem>>, vector<1x16x4xf32>
      tpu.vector_store %arg7[%c9, %c1_66, %c0_67], %21 {strides = array<i32>} : memref<10x18x4xf32, #tpu.memory_space<vmem>>, vector<1x16x4xf32>,
    } else {
    }
    %c1_i32_19 = arith.constant 1 : i32
    %31 = arith.cmpi slt, %arg1, %c1_i32_19 : i32
    %32 = arith.extui %31 : i1 to i32
    %c0_i32_20 = arith.constant 0 : i32
    %33 = arith.cmpi ne, %32, %c0_i32_20 : i32
    scf.if %33 {
      %c8_i32_66 = arith.constant 8 : i32
      %69 = arith.addi %1, %c8_i32_66 : i32
      %c0_67 = arith.constant 0 : index
      %70 = arith.index_cast %69 : i32 to index
      %c0_68 = arith.constant 0 : index
      %c0_69 = arith.constant 0 : index
      %71 = vector.load %arg2[%c0_67, %70, %c0_68, %c0_69] : memref<1x16x16x4xf32, #tpu.memory_space<vmem>>, vector<1x1x16x4xf32>
      %72 = vector.shape_cast %71 : vector<1x1x16x4xf32> to vector<1x16x4xf32>
      %73 = vector.shape_cast %3 : vector<4xf32> to vector<1x1x4xf32>
      %74 = vector.broadcast %73 : vector<1x1x4xf32> to vector<1x16x4xf32>
      %75 = arith.mulf %72, %74 : vector<1x16x4xf32>
      %76 = vector.shape_cast %5 : vector<4xf32> to vector<1x1x4xf32>
      %77 = vector.broadcast %76 : vector<1x1x4xf32> to vector<1x16x4xf32>
      %78 = arith.addf %75, %77 : vector<1x16x4xf32>
      %cst_70 = arith.constant 0.000000e+00 : f32
      %79 = vector.broadcast %cst_70 : f32 to vector<1x16x4xf32>
      %80 = arith.maximumf %78, %79 : vector<1x16x4xf32>
      %c9 = arith.constant 9 : index
      %c1_71 = arith.constant 1 : index
      %c0_72 = arith.constant 0 : index
      %81 = vector.load %arg7[%c9, %c1_71, %c0_72] : memref<10x18x4xf32, #tpu.memory_space<vmem>>, vector<1x16x4xf32>
      tpu.vector_store %arg7[%c9, %c1_71, %c0_72], %80 {strides = array<i32>} : memref<10x18x4xf32, #tpu.memory_space<vmem>>, vector<1x16x4xf32>,
    } else {
    }
    %c0_21 = arith.constant 0 : index
    %c0_22 = arith.constant 0 : index
    %c0_23 = arith.constant 0 : index
    %34 = vector.load %arg7[%c0_21, %c0_22, %c0_23] : memref<10x18x4xf32, #tpu.memory_space<vmem>>, vector<8x16x4xf32>
    %35 = vector.shape_cast %34 : vector<8x16x4xf32> to vector<128x4xf32>
    %c0_24 = arith.constant 0 : index
    %c0_25 = arith.constant 0 : index
    %36 = vector.load %arg8[%c0_24, %c0_25] : memref<128x36xf32, #tpu.memory_space<vmem>>, vector<128x4xf32>
    tpu.vector_store %arg8[%c0_24, %c0_25], %35 {strides = array<i32>} : memref<128x36xf32, #tpu.memory_space<vmem>>, vector<128x4xf32>,
    %c0_26 = arith.constant 0 : index
    %c1_27 = arith.constant 1 : index
    %c0_28 = arith.constant 0 : index
    %37 = vector.load %arg7[%c0_26, %c1_27, %c0_28] : memref<10x18x4xf32, #tpu.memory_space<vmem>>, vector<8x16x4xf32>
    %38 = vector.shape_cast %37 : vector<8x16x4xf32> to vector<128x4xf32>
    %c0_29 = arith.constant 0 : index
    %c4 = arith.constant 4 : index
    %39 = vector.load %arg8[%c0_29, %c4] : memref<128x36xf32, #tpu.memory_space<vmem>>, vector<128x4xf32>
    tpu.vector_store %arg8[%c0_29, %c4], %38 {strides = array<i32>} : memref<128x36xf32, #tpu.memory_space<vmem>>, vector<128x4xf32>,
    %c0_30 = arith.constant 0 : index
    %c2 = arith.constant 2 : index
    %c0_31 = arith.constant 0 : index
    %40 = vector.load %arg7[%c0_30, %c2, %c0_31] : memref<10x18x4xf32, #tpu.memory_space<vmem>>, vector<8x16x4xf32>
    %41 = vector.shape_cast %40 : vector<8x16x4xf32> to vector<128x4xf32>
    %c0_32 = arith.constant 0 : index
    %c8 = arith.constant 8 : index
    %42 = vector.load %arg8[%c0_32, %c8] : memref<128x36xf32, #tpu.memory_space<vmem>>, vector<128x4xf32>
    tpu.vector_store %arg8[%c0_32, %c8], %41 {strides = array<i32>} : memref<128x36xf32, #tpu.memory_space<vmem>>, vector<128x4xf32>,
    %c1_33 = arith.constant 1 : index
    %c0_34 = arith.constant 0 : index
    %c0_35 = arith.constant 0 : index
    %43 = vector.load %arg7[%c1_33, %c0_34, %c0_35] : memref<10x18x4xf32, #tpu.memory_space<vmem>>, vector<8x16x4xf32>
    %44 = vector.shape_cast %43 : vector<8x16x4xf32> to vector<128x4xf32>
    %c0_36 = arith.constant 0 : index
    %c12 = arith.constant 12 : index
    %45 = vector.load %arg8[%c0_36, %c12] : memref<128x36xf32, #tpu.memory_space<vmem>>, vector<128x4xf32>
    tpu.vector_store %arg8[%c0_36, %c12], %44 {strides = array<i32>} : memref<128x36xf32, #tpu.memory_space<vmem>>, vector<128x4xf32>,
    %c1_37 = arith.constant 1 : index
    %c1_38 = arith.constant 1 : index
    %c0_39 = arith.constant 0 : index
    %46 = vector.load %arg7[%c1_37, %c1_38, %c0_39] : memref<10x18x4xf32, #tpu.memory_space<vmem>>, vector<8x16x4xf32>
    %47 = vector.shape_cast %46 : vector<8x16x4xf32> to vector<128x4xf32>
    %c0_40 = arith.constant 0 : index
    %c16 = arith.constant 16 : index
    %48 = vector.load %arg8[%c0_40, %c16] : memref<128x36xf32, #tpu.memory_space<vmem>>, vector<128x4xf32>
    tpu.vector_store %arg8[%c0_40, %c16], %47 {strides = array<i32>} : memref<128x36xf32, #tpu.memory_space<vmem>>, vector<128x4xf32>,
    %c1_41 = arith.constant 1 : index
    %c2_42 = arith.constant 2 : index
    %c0_43 = arith.constant 0 : index
    %49 = vector.load %arg7[%c1_41, %c2_42, %c0_43] : memref<10x18x4xf32, #tpu.memory_space<vmem>>, vector<8x16x4xf32>
    %50 = vector.shape_cast %49 : vector<8x16x4xf32> to vector<128x4xf32>
    %c0_44 = arith.constant 0 : index
    %c20 = arith.constant 20 : index
    %51 = vector.load %arg8[%c0_44, %c20] : memref<128x36xf32, #tpu.memory_space<vmem>>, vector<128x4xf32>
    tpu.vector_store %arg8[%c0_44, %c20], %50 {strides = array<i32>} : memref<128x36xf32, #tpu.memory_space<vmem>>, vector<128x4xf32>,
    %c2_45 = arith.constant 2 : index
    %c0_46 = arith.constant 0 : index
    %c0_47 = arith.constant 0 : index
    %52 = vector.load %arg7[%c2_45, %c0_46, %c0_47] : memref<10x18x4xf32, #tpu.memory_space<vmem>>, vector<8x16x4xf32>
    %53 = vector.shape_cast %52 : vector<8x16x4xf32> to vector<128x4xf32>
    %c0_48 = arith.constant 0 : index
    %c24 = arith.constant 24 : index
    %54 = vector.load %arg8[%c0_48, %c24] : memref<128x36xf32, #tpu.memory_space<vmem>>, vector<128x4xf32>
    tpu.vector_store %arg8[%c0_48, %c24], %53 {strides = array<i32>} : memref<128x36xf32, #tpu.memory_space<vmem>>, vector<128x4xf32>,
    %c2_49 = arith.constant 2 : index
    %c1_50 = arith.constant 1 : index
    %c0_51 = arith.constant 0 : index
    %55 = vector.load %arg7[%c2_49, %c1_50, %c0_51] : memref<10x18x4xf32, #tpu.memory_space<vmem>>, vector<8x16x4xf32>
    %56 = vector.shape_cast %55 : vector<8x16x4xf32> to vector<128x4xf32>
    %c0_52 = arith.constant 0 : index
    %c28 = arith.constant 28 : index
    %57 = vector.load %arg8[%c0_52, %c28] : memref<128x36xf32, #tpu.memory_space<vmem>>, vector<128x4xf32>
    tpu.vector_store %arg8[%c0_52, %c28], %56 {strides = array<i32>} : memref<128x36xf32, #tpu.memory_space<vmem>>, vector<128x4xf32>,
    %c2_53 = arith.constant 2 : index
    %c2_54 = arith.constant 2 : index
    %c0_55 = arith.constant 0 : index
    %58 = vector.load %arg7[%c2_53, %c2_54, %c0_55] : memref<10x18x4xf32, #tpu.memory_space<vmem>>, vector<8x16x4xf32>
    %59 = vector.shape_cast %58 : vector<8x16x4xf32> to vector<128x4xf32>
    %c0_56 = arith.constant 0 : index
    %c32 = arith.constant 32 : index
    %60 = vector.load %arg8[%c0_56, %c32] : memref<128x36xf32, #tpu.memory_space<vmem>>, vector<128x4xf32>
    tpu.vector_store %arg8[%c0_56, %c32], %59 {strides = array<i32>} : memref<128x36xf32, #tpu.memory_space<vmem>>, vector<128x4xf32>,
    %c0_57 = arith.constant 0 : index
    %c0_58 = arith.constant 0 : index
    %61 = vector.load %arg8[%c0_57, %c0_58] : memref<128x36xf32, #tpu.memory_space<vmem>>, vector<128x36xf32>
    %c0_59 = arith.constant 0 : index
    %c0_60 = arith.constant 0 : index
    %62 = vector.load %arg5[%c0_59, %c0_60] : memref<36x8xf32, #tpu.memory_space<vmem>>, vector<36x8xf32>
    %cst_61 = arith.constant dense<0.000000e+00> : vector<128x8xf32>
    %63 = tpu.matmul %61, %62, %cst_61 {dimension_numbers = #tpu.dot_dimension_numbers<[1], [0], [0], [1], [0, 0, 1, 1], [], []>} : vector<128x36xf32>, vector<36x8xf32>, vector<128x8xf32> -> vector<128x8xf32>
    %64 = vector.shape_cast %63 : vector<128x8xf32> to vector<8x16x8xf32>
    %65 = tpu.concatenate %11, %64 in 2 : vector<8x16x4xf32>, vector<8x16x8xf32> -> vector<8x16x12xf32>
    %c0_62 = arith.constant 0 : index
    %c0_63 = arith.constant 0 : index
    %c0_64 = arith.constant 0 : index
    %c0_65 = arith.constant 0 : index
    %66 = vector.load %arg6[%c0_62, %c0_63, %c0_64, %c0_65] : memref<1x8x16x12xf32, #tpu.memory_space<vmem>>, vector<1x8x16x12xf32>
    %67 = vector.shape_cast %66 : vector<1x8x16x12xf32> to vector<8x16x12xf32>
    %68 = vector.shape_cast %65 : vector<8x16x12xf32> to vector<1x8x16x12xf32>
    tpu.vector_store %arg6[%c0_62, %c0_63, %c0_64, %c0_65], %68 {strides = array<i32>} : memref<1x8x16x12xf32, #tpu.memory_space<vmem>>, vector<1x8x16x12xf32>,
    return
  }
  func.func @transform_0(%arg0: i32, %arg1: i32) -> (i32, i32, i32, i32) {
    %c0_i32 = arith.constant 0 : i32
    %c0_i32_0 = arith.constant 0 : i32
    %c0_i32_1 = arith.constant 0 : i32
    %c0_i32_2 = arith.constant 0 : i32
    return %arg0, %c0_i32, %c0_i32_0, %c0_i32_1 : i32, i32, i32, i32
  }
  func.func @transform_1(%arg0: i32, %arg1: i32) -> (i32, i32) {
    %c0_i32 = arith.constant 0 : i32
    %c0_i32_0 = arith.constant 0 : i32
    %c0_i32_1 = arith.constant 0 : i32
    return %c0_i32, %c0_i32_0 : i32, i32
  }
  func.func @transform_2(%arg0: i32, %arg1: i32) -> (i32, i32) {
    %c0_i32 = arith.constant 0 : i32
    %c0_i32_0 = arith.constant 0 : i32
    %c0_i32_1 = arith.constant 0 : i32
    return %c0_i32, %c0_i32_0 : i32, i32
  }
  func.func @transform_3(%arg0: i32, %arg1: i32) -> (i32, i32) {
    %c0_i32 = arith.constant 0 : i32
    %c0_i32_0 = arith.constant 0 : i32
    %c0_i32_1 = arith.constant 0 : i32
    return %c0_i32, %c0_i32_0 : i32, i32
  }
  func.func @transform_4(%arg0: i32, %arg1: i32) -> (i32, i32, i32, i32) {
    %c0_i32 = arith.constant 0 : i32
    %c0_i32_0 = arith.constant 0 : i32
    %c0_i32_1 = arith.constant 0 : i32
    return %arg0, %arg1, %c0_i32, %c0_i32_0 : i32, i32, i32, i32
  }
}

</mosaic_0001>

<bundles_post_ra>
// kernel: tpu_custom_call.1
= control target key start
LH: loop header
LB: loop body
LE: loop exit
PB: predicated region body
PF: predicated region fallthrough
CT: control target
= control target key end

     0   :  { %s1717_s15 = smov 0   ;;  %s1719_s16 = smov 0   ;;  %s2576_s0 = inlined_call_operand.vmem [shape: f32[2,16,16,4], index: 0, kind: input, shape index: {}]   ;;  %s2577_s1 = inlined_call_operand.vmem [shape: f32[1,4], index: 1, kind: input, shape index: {}]   ;;  %s2578_s2 = inlined_call_operand.vmem [shape: f32[1,4], index: 2, kind: input, shape index: {}]   ;;  %s2579_s3 = inlined_call_operand.vmem [shape: f32[36,8], index: 3, kind: input, shape index: {}]   ;;  %s2580_s4 = inlined_call_operand.vmem [shape: f32[2,16,16,12], index: 4, kind: output, shape index: {}]  }
   0x1   :  { %s1721_s17 = smov 0   ;;  %s1723_s18 = smov 0  }
   0x2   :  { %s1725_s19 = smov 0  }
   0x3 LB: > { %s23_s20 = sadd.s32 1, %s1671_s17  ;;  %s26_s21 = sadd.s32 1, %s1675_s18  ;;  %s1679_s19 = sphi %s1725_s19, %s14_s19   ;;  %s1675_s18 = sphi %s1723_s18, %s2584_s18   ;;  %s1671_s17 = sphi %s1721_s17, %s2583_s17   ;;  %s1667_s16 = sphi %s1719_s16, %s2582_s16   ;;  %s1663_s15 = sphi %s1717_s15, %s2581_s15  }
   0x4   : > { %p24_p0 = scmp.ge.s32.totalorder %s23_s20, 2  ;;  %p1532_p1 = scmp.ge.s32.totalorder %s1679_s19, 1 }
   0x5   : > { %p176_p2 = scmp.lt.s32.totalorder %s1679_s19, 5 }
   0x6   : > { %s2586_s20 = smov (%p24_p0, %s23_s20), 0  ;;  %s2588_s21 = smov (!%p24_p0, %s26_s21), %s1675_s18 }
   0x7   : > { %p177_p3 = pnand %p1532_p1, %p176_p2  ;;  %p28_p4 = scmp.ge.s32.totalorder %s2588_s21, 2 }
   0x8   : > { %p207_p5 = scmp.lt.s32.totalorder (!%p177_p3), %s1667_s16, 1  ;;  %s1750_s22 = sshll.u32 (!%p177_p3), %s1663_s15, 3 }
   0x9   : > { %s2590_s21 = smov (%p28_p4, %s2588_s21), 0  ;;  %180 = sbr.rel (%p177_p3) target bundleno = 815 (0x32f), region = 36 }
   0xa   : > { %p215_p6 = scmp.lt.s32.totalorder (!%p177_p3), %s1750_s22, 15  ;;  %s1571_s23 = sshll.u32 (!%p177_p3), %s1663_s15, 7 }
   0xb   : > { %p1541_p7 = scmp.ne.s32.totalorder (!%p177_p3), %s1663_s15, 0 }
   0xe   : > { %vm226_vm0 = vcmask 24576   ;;  %v1681_v0 = vmov 0.0   ;;  %s2592_s16 = smov (!%p207_p5, %s1667_s16), 1  ;;  %v1773_v1 = vld [vmem:[%s2577_s1] ss:$0 sm:$0xff]  ;;  %vm320_vm1 = vcmask 31744  }
   0xf   : > { %227 = vst.msk [vmem:[#allocation2] sm:$0x1] %vm226_vm0, %v1681_v0  ;;  %s216_s24 = scalar_select %p215_p6, %s1750_s22, 15  ;;  %v1805_v6 = vld [vmem:[%s2578_s2] ss:$0 sm:$0xff] }
  0x10   : > { %228 = vst.msk [vmem:[#allocation2 + $0x18] sm:$0x1] %vm226_vm0, %v1681_v0  ;;  %s1570_s25 = sshll.u32 %s2592_s16, 8  ;;  %s1537_s26 = sshll.u32 %s2592_s16, 5 }
  0x11   : > { %229 = vst.msk [vmem:[#allocation2 + $0x30] sm:$0x1] %vm226_vm0, %v1681_v0  ;;  %s1768_s29 = scalar_lea.vmem %s2576_s0, %s1570_s25  ;;  %s1536_s30 = sshll.u32 %s216_s24, 1 }
  0x12   : > { %230 = vst.msk [vmem:[#allocation2 + $0x48] sm:$0x1] %vm226_vm0, %v1681_v0  ;;  %s219_s7 = sadd.s32 %s1537_s26, %s1536_s30  ;;  %s1778_s8 = scalar_lea.vmem %s1768_s29, %s1571_s23 }
  0x13   : > { %231 = vst.msk [vmem:[#allocation2 + $0x60] sm:$0x1] %vm226_vm0, %v1681_v0  ;;  %s1538_s9 = sshll.u32 %s219_s7, 3  ;;  %v1783_v2 = vld [vmem:[%s1778_s8] sm:$0xff]  ;;  %v1786_v3 = vld [vmem:[%s1778_s8 + $0x8] sm:$0xff]  ;;  %v1796_v4 = vld [vmem:[%s1778_s8 + $0x10] sm:$0xff] }
  0x14   : > { %232 = vst.msk [vmem:[#allocation2 + $0x78] sm:$0x1] %vm226_vm0, %v1681_v0  ;;  %s1793_s12 = scalar_lea.vmem %s2580_s4, %s1538_s9  ;;  %v268_v5 = vmul.f32 %v1773_v1, %v1783_v2  ;;  %v1808_v7 = vld [vmem:[%s1778_s8 + $0x18] sm:$0xff]  ;;  %v269_v8 = vmul.f32 %v1773_v1, %v1786_v3  ;;  %v1815_v9 = vld [vmem:[%s1778_s8 + $0x20] sm:$0xff]  ;;  %v270_v10 = vmul.f32 %v1773_v1, %v1796_v4  ;;  %v1822_v11 = vld [vmem:[%s1778_s8 + $0x28] sm:$0xff] }
  0x15   : > { %233 = vst.msk [vmem:[#allocation2 + $0x90] sm:$0x1] %vm226_vm0, %v1681_v0  ;;  %v271_v12 = vmul.f32 %v1773_v1, %v1808_v7  ;;  %v1829_v13 = vld [vmem:[%s1778_s8 + $0x30] sm:$0xff]  ;;  %v272_v15 = vmul.f32 %v1773_v1, %v1815_v9  ;;  %v1837_v16 = vld [vmem:[%s1778_s8 + $0x38] sm:$0xff]  ;;  %v273_v18 = vmul.f32 %v1773_v1, %v1822_v11  ;;  %v1845_v19 = vld [vmem:[%s1778_s8 + $0x40] sm:$0xff] }
  0x16   : > { %234 = vst.msk [vmem:[#allocation2 + $0xa8] sm:$0x1] %vm226_vm0, %v1681_v0  ;;  %v287_v14 = vadd.f32 %v1805_v6, %v268_v5  ;;  %v288_v17 = vadd.f32 %v1805_v6, %v269_v8  ;;  %v289_v20 = vadd.f32 %v1805_v6, %v270_v10  ;;  %v274_v21 = vmul.f32 %v1773_v1, %v1829_v13  ;;  %v1853_v22 = vld [vmem:[%s1778_s8 + $0x48] sm:$0xff]  ;;  %v1861_v25 = vld [vmem:[%s1778_s8 + $0x50] sm:$0xff]  ;;  %v1869_v29 = vld [vmem:[%s1778_s8 + $0x58] sm:$0xff] }
  0x17   : > { %235 = vst.msk [vmem:[#allocation2 + $0xc0] sm:$0x1] %vm226_vm0, %v1681_v0  ;;  %v290_v23 = vadd.f32 %v1805_v6, %v271_v12  ;;  %v275_v24 = vmul.f32 %v1773_v1, %v1837_v16  ;;  %v291_v27 = vadd.f32 %v1805_v6, %v272_v15  ;;  %v276_v28 = vmul.f32 %v1773_v1, %v1845_v19  ;;  %v1877_v33 = vld [vmem:[%s1778_s8 + $0x60] sm:$0xff]  ;;  %v1885_v37 = vld [vmem:[%s1778_s8 + $0x68] sm:$0xff]  ;;  %v1893_v41 = vld [vmem:[%s1778_s8 + $0x70] sm:$0xff] }
  0x18   : > { %236 = vst.msk [vmem:[#allocation2 + $0xd8] sm:$0x1] %vm226_vm0, %v1681_v0  ;;  %v303_v26 = vmax.f32 %v287_v14, 0.0  ;;  %v304_v30 = vmax.f32 %v288_v17, 0.0  ;;  %v292_v31 = vadd.f32 %v1805_v6, %v273_v18  ;;  %v277_v32 = vmul.f32 %v1773_v1, %v1853_v22  ;;  %v1900_v45 = vld [vmem:[%s1778_s8 + $0x78] sm:$0xff] }
  0x19   : > { %237 = vst.msk [vmem:[#allocation2 + $0x11] sm:$0x1] %vm226_vm0, %v1681_v0  ;;  %v305_v34 = vmax.f32 %v289_v20, 0.0  ;;  %v293_v35 = vadd.f32 %v1805_v6, %v274_v21  ;;  %v278_v36 = vmul.f32 %v1773_v1, %v1861_v25  ;;  %v306_v38 = vmax.f32 %v290_v23, 0.0 }
  0x1a   : > { %238 = vst.msk [vmem:[#allocation2 + $0x29] sm:$0x1] %vm226_vm0, %v1681_v0  ;;  %v294_v39 = vadd.f32 %v1805_v6, %v275_v24  ;;  %v279_v40 = vmul.f32 %v1773_v1, %v1869_v29  ;;  %v307_v42 = vmax.f32 %v291_v27, 0.0  ;;  %v295_v43 = vadd.f32 %v1805_v6, %v276_v28 }
  0x1b   : > { %239 = vst.msk [vmem:[#allocation2 + $0x41] sm:$0x1] %vm226_vm0, %v1681_v0  ;;  %v280_v44 = vmul.f32 %v1773_v1, %v1877_v33  ;;  %v308_v46 = vmax.f32 %v292_v31, 0.0  ;;  %v296_v47 = vadd.f32 %v1805_v6, %v277_v32  ;;  %v281_v48 = vmul.f32 %v1773_v1, %v1885_v37 }
  0x1c   : > { %240 = vst.msk [vmem:[#allocation2 + $0x59] sm:$0x1] %vm226_vm0, %v1681_v0  ;;  %v309_v49 = vmax.f32 %v293_v35, 0.0  ;;  %v297_v50 = vadd.f32 %v1805_v6, %v278_v36  ;;  %v282_v51 = vmul.f32 %v1773_v1, %v1893_v41  ;;  %v310_v52 = vmax.f32 %v294_v39, 0.0 }
  0x1d   : > { %241 = vst.msk [vmem:[#allocation2 + $0x71] sm:$0x1] %vm226_vm0, %v1681_v0  ;;  %v298_v53 = vadd.f32 %v1805_v6, %v279_v40  ;;  %v283_v54 = vmul.f32 %v1773_v1, %v1900_v45  ;;  %v311_v55 = vmax.f32 %v295_v43, 0.0  ;;  %v299_v56 = vadd.f32 %v1805_v6, %v280_v44 }
  0x1e   : > { %242 = vst.msk [vmem:[#allocation2 + $0x89] sm:$0x1] %vm226_vm0, %v1681_v0  ;;  %v312_v57 = vmax.f32 %v296_v47, 0.0  ;;  %v300_v58 = vadd.f32 %v1805_v6, %v281_v48  ;;  %v313_v59 = vmax.f32 %v297_v50, 0.0  ;;  %v301_v60 = vadd.f32 %v1805_v6, %v282_v51 }
  0x1f   : > { %243 = vst.msk [vmem:[#allocation2 + $0xa1] sm:$0x1] %vm226_vm0, %v1681_v0  ;;  %v314_v61 = vmax.f32 %v298_v53, 0.0  ;;  %v302_v62 = vadd.f32 %v1805_v6, %v283_v54  ;;  %v315_v63 = vmax.f32 %v299_v56, 0.0 }
  0x20   : > { %244 = vst.msk [vmem:[#allocation2 + $0xb9] sm:$0x1] %vm226_vm0, %v1681_v0  ;;  %v317_v5 = vmax.f32 %v301_v60, 0.0 }
  0x21   : > { %245 = vst.msk [vmem:[#allocation2 + $0xd1] sm:$0x1] %vm226_vm0, %v1681_v0  ;;  %v318_v8 = vmax.f32 %v302_v62, 0.0 }
  0x22   : > { %246 = vst.msk [vmem:[#allocation2 + $0xe9] sm:$0x1] %vm226_vm0, %v1681_v0  ;;  %v316_v0 = vmax.f32 %v300_v58, 0.0 }
  0x23   : > { %321 = vst.msk [vmem:[#allocation2 + $0x19] sm:$0xff] %vm320_vm1, %v303_v26 }
  0x24   : > { %322 = vst.msk [vmem:[#allocation2 + $0x21] sm:$0xff] %vm320_vm1, %v304_v30 }
  0x25   : > { %323 = vst.msk [vmem:[#allocation2 + $0x31] sm:$0xff] %vm320_vm1, %v305_v34 }
  0x26   : > { %324 = vst.msk [vmem:[#allocation2 + $0x39] sm:$0xff] %vm320_vm1, %v306_v38 }
  0x27   : > { %325 = vst.msk [vmem:[#allocation2 + $0x49] sm:$0xff] %vm320_vm1, %v307_v42 }
  0x28   : > { %326 = vst.msk [vmem:[#allocation2 + $0x51] sm:$0xff] %vm320_vm1, %v308_v46 }
  0x29   : > { %327 = vst.msk [vmem:[#allocation2 + $0x61] sm:$0xff] %vm320_vm1, %v309_v49 }
  0x2a   : > { %328 = vst.msk [vmem:[#allocation2 + $0x69] sm:$0xff] %vm320_vm1, %v310_v52 }
  0x2b   : > { %329 = vst.msk [vmem:[#allocation2 + $0x79] sm:$0xff] %vm320_vm1, %v311_v55 }
  0x2c   : > { %330 = vst.msk [vmem:[#allocation2 + $0x81] sm:$0xff] %vm320_vm1, %v312_v57 }
  0x2d   : > { %331 = vst.msk [vmem:[#allocation2 + $0x91] sm:$0xff] %vm320_vm1, %v313_v59 }
  0x2e   : > { %332 = vst.msk [vmem:[#allocation2 + $0x99] sm:$0xff] %vm320_vm1, %v314_v61  ;;  %340 = sbr.rel (%p1541_p7) target bundleno = 54 (0x36), region = 40 }
  0x2f   : > { %333 = vst.msk [vmem:[#allocation2 + $0xa9] sm:$0xff] %vm320_vm1, %v315_v63 }
  0x30   : > { %334 = vst.msk [vmem:[#allocation2 + $0xb1] sm:$0xff] %vm320_vm1, %v316_v0 }
  0x31   : > { %335 = vst.msk [vmem:[#allocation2 + $0xc1] sm:$0xff] %vm320_vm1, %v317_v5 }
  0x32   : > { %336 = vst.msk [vmem:[#allocation2 + $0xc9] sm:$0xff] %vm320_vm1, %v318_v8 }
  0x33   : > { %v1682_v10 = vmov 0.0  }
  0x34   : > { %341 = vst.msk [vmem:[#allocation2 + $0x1] sm:$0xff] %vm320_vm1, %v1682_v10 }
  0x35   : > { %342 = vst.msk [vmem:[#allocation2 + $0x9] sm:$0xff] %vm320_vm1, %v1682_v10 }
  0x36 PF: > { %p1542_p8 = scmp.le.s32.totalorder %s1663_s15, 0 }
  0x37   : > { %s1543_s16 = sadd.s32 (!%p1542_p8), 4294967295, %s1750_s22 }
  0x38   : > { %346 = sbr.rel (%p1542_p8) target bundleno = 70 (0x46), region = 44  ;;  %s1544_s23 = sshll.u32 (!%p1542_p8), %s1543_s16, 4 }
  0x39   : > { %s349_s24 = scalar_lea.vmem (!%p1542_p8), %s1768_s29, %s1544_s23 }
  0x3d   : > { %v350_v12 = vld [vmem:[%s349_s24] sm:$0xff]  ;;  %v351_v14 = vld [vmem:[%s349_s24 + $0x8] sm:$0xff] }
  0x3e   : > { %v352_v15 = vmul.f32 %v1773_v1, %v350_v12  ;;  %v353_v17 = vmul.f32 %v1773_v1, %v351_v14 }
  0x40   : > { %v354_v18 = vadd.f32 %v1805_v6, %v352_v15  ;;  %v355_v20 = vadd.f32 %v1805_v6, %v353_v17 }
  0x42   : > { %v356_v21 = vmax.f32 %v354_v18, 0.0  ;;  %v357_v23 = vmax.f32 %v355_v20, 0.0 }
  0x44   : > { %358 = vst.msk [vmem:[#allocation2 + $0x1] sm:$0xff] %vm320_vm1, %v356_v21 }
  0x45   : > { %359 = vst.msk [vmem:[#allocation2 + $0x9] sm:$0xff] %vm320_vm1, %v357_v23 }
  0x46 PF: > { %p1545_p9 = scmp.ne.s32.totalorder %s1663_s15, 1 }
  0x48   : > { %363 = sbr.rel (%p1545_p9) target bundleno = 80 (0x50), region = 48 }
  0x4d   : > { %v1683_v24 = vmov 0.0  }
  0x4e   : > { %365 = vst.msk [vmem:[#allocation2 + $0xd9] sm:$0xff] %vm320_vm1, %v1683_v24 }
  0x4f   : > { %366 = vst.msk [vmem:[#allocation2 + $0xe1] sm:$0xff] %vm320_vm1, %v1683_v24 }
  0x50 PF: > { %p1546_p10 = scmp.ge.s32.totalorder %s1663_s15, 1 }
  0x52   : > { %370 = sbr.rel (%p1546_p10) target bundleno = 96 (0x60), region = 52 }
  0x57   : > { %v1549_v26 = vld [vmem:[%s1778_s8 + $0x80] sm:$0xff]  ;;  %v1550_v27 = vld [vmem:[%s1778_s8 + $0x88] sm:$0xff] }
  0x58   : > { %v376_v28 = vmul.f32 %v1773_v1, %v1549_v26  ;;  %v377_v30 = vmul.f32 %v1773_v1, %v1550_v27 }
  0x5a   : > { %v378_v31 = vadd.f32 %v1805_v6, %v376_v28  ;;  %v379_v32 = vadd.f32 %v1805_v6, %v377_v30 }
  0x5c   : > { %v380_v34 = vmax.f32 %v378_v31, 0.0  ;;  %v381_v35 = vmax.f32 %v379_v32, 0.0 }
  0x5e   : > { %383 = vst.msk [vmem:[#allocation2 + $0xd9] sm:$0xff] %vm320_vm1, %v380_v34 }
  0x5f   : > { %384 = vst.msk [vmem:[#allocation2 + $0xe1] sm:$0xff] %vm320_vm1, %v381_v35 }
  0x60 PF: > { %v1954_v36 = vld [vmem:[#allocation2 + $0x19] sm:$0xff]  ;;  %v417_v38 = vld [vmem:[#allocation2 + $0x1] sm:$0xff]  ;;  %s1684_s15 = smov 4   ;;  %v1959_v1 = vld [vmem:[#allocation2 + $0x31] sm:$0xff]  ;;  %s1685_s22 = smov 8   ;;  %vm497_vm2 = vcmask 64544  }
  0x61   : > { %453 = vrot.lane.b32.xlu1 %v1954_v36, %s1684_s15  ;;  %449 = vrot.lane.b32.xlu0 %v417_v38, %s1684_s15  ;;  %v1963_v6 = vld [vmem:[#allocation2 + $0x21] sm:$0xff]  ;;  %v418_v39 = vld [vmem:[#allocation2 + $0x9] sm:$0xff]  ;;  %v1965_v40 = vld [vmem:[#allocation2 + $0x39] sm:$0xff]  ;;  %s1686_s25 = smov 12   ;;  %s1687_s26 = smov 16   ;;  %vm594_vm3 = vcmask 97344  }
  0x62   : > { %457 = vrot.lane.b32.xlu2 %v1959_v1, %s1684_s15  ;;  %v1972_v42 = vld [vmem:[#allocation2 + $0x51] sm:$0xff]  ;;  %v1974_v43 = vld [vmem:[#allocation2 + $0x49] sm:$0xff]  ;;  %v1976_v44 = vld [vmem:[#allocation2 + $0x61] sm:$0xff]  ;;  %s1688_s27 = smov 20   ;;  %s1689_s28 = smov 24   ;;  %vm691_vm4 = vcmask 130144  }
  0x63   : > { %v1984_v46 = vld [vmem:[#allocation2 + $0x79] sm:$0xff]  ;;  %v1986_v47 = vld [vmem:[#allocation2 + $0x69] sm:$0xff]  ;;  %v1988_v48 = vld [vmem:[#allocation2 + $0x81] sm:$0xff]  ;;  %s1690_s29 = smov 28   ;;  %s1691_s30 = smov 32   ;;  %vm788_vm5 = vcmask 162944  }
  0x64   : > { %v1996_v49 = vld [vmem:[#allocation2 + $0x99] sm:$0xff]  ;;  %v1998_v50 = vld [vmem:[#allocation2 + $0x91] sm:$0xff]  ;;  %v2000_v51 = vld [vmem:[#allocation2 + $0xa9] sm:$0xff]  ;;  %vm885_vm6 = vcmask 195744   ;;  %vm1264_vm7 = vcmask 1043456   ;;  %vm983_vm8 = vcmask 228544  }
  0x65   : > { %v514_v52 = vld [vmem:[#allocation2 + $0x2] sm:$0xff]  ;;  %v2008_v53 = vld [vmem:[#allocation2 + $0xb1] sm:$0xff]  ;;  %v2016_v56 = vld [vmem:[#allocation2 + $0x1a] sm:$0xff]  ;;  %vm1080_vm9 = vcmask 261344   ;;  %vm1177_vm10 = vcmask 294144   ;;  %vm1215_vm11 = vcmask 293888  }
  0x66   : > { %v515_v54 = vld [vmem:[#allocation2 + $0xa] sm:$0xff]  ;;  %v2014_v55 = vld [vmem:[#allocation2 + $0x22] sm:$0xff]  ;;  %v2018_v57 = vld [vmem:[#allocation2 + $0x32] sm:$0xff]  ;;  %vm1413_vm12 = vcmask 97280  }
  0x67   : > { %v2024_v58 = vld [vmem:[#allocation2 + $0x30] sm:$0xff]  ;;  %v2032_v60 = vld [vmem:[#allocation2 + $0x3a] sm:$0xff]  ;;  %v2049_v5 = vld [vmem:[#allocation2 + $0x62] sm:$0xff] }
  0x68   : > { %405 = vst.msk [vmem:[#allocation3 + $0x20] sm:$0xff] %vm320_vm1, %v2024_v58  ;;  %v2030_v59 = vld [vmem:[#allocation2 + $0x4a] sm:$0xff]  ;;  %v2034_v61 = vld [vmem:[#allocation2 + $0x52] sm:$0xff]  ;;  %v612_v62 = vld [vmem:[#allocation2 + $0x20] sm:$0xff] }
  0x69   : > { %455 = vrot.lane.b32.xlu1 %v1963_v6, %s1684_s15  ;;  %451 = vrot.lane.b32.xlu0 %v418_v39, %s1684_s15  ;;  %v2040_v63 = vld [vmem:[#allocation2 + $0x50] sm:$0xff]  ;;  %404 = vst.msk [vmem:[#allocation3 + $0x18] sm:$0xff] %vm320_vm1, %v612_v62  ;;  %v2051_v8 = vld [vmem:[#allocation2 + $0x7a] sm:$0xff]  ;;  %v2053_v10 = vld [vmem:[#allocation2 + $0x48] sm:$0xff] }
  0x6a   : > { %459 = vrot.lane.b32.xlu2 %v1965_v40, %s1684_s15  ;;  %408 = vst.msk [vmem:[#allocation3 + $0x38] sm:$0xff] %vm320_vm1, %v2040_v63  ;;  %v2047_v0 = vld [vmem:[#allocation2 + $0x6a] sm:$0xff]  ;;  %v2059_v12 = vld [vmem:[#allocation2 + $0x78] sm:$0xff]  ;;  %v2069_v15 = vld [vmem:[#allocation2 + $0x82] sm:$0xff] }
  0x6b   : > { %407 = vst.msk [vmem:[#allocation3 + $0x30] sm:$0xff] %vm320_vm1, %v2053_v10  ;;  %v2067_v14 = vld [vmem:[#allocation2 + $0x92] sm:$0xff]  ;;  %v2071_v17 = vld [vmem:[#allocation2 + $0x9a] sm:$0xff]  ;;  %v2073_v18 = vld [vmem:[#allocation2 + $0x68] sm:$0xff] }
  0x6c   : > { %411 = vst.msk [vmem:[#allocation3 + $0x50] sm:$0xff] %vm320_vm1, %v2059_v12  ;;  %v611_v20 = vld [vmem:[#allocation2 + $0x18] sm:$0xff]  ;;  %v2090_v24 = vld [vmem:[#allocation2 + $0xaa] sm:$0xff]  ;;  %v385_v27 = vld [vmem:[#allocation2] sm:$0xff] }
  0x6d   : > { %410 = vst.msk [vmem:[#allocation3 + $0x48] sm:$0xff] %vm320_vm1, %v2073_v18  ;;  %v2081_v21 = vld [vmem:[#allocation2 + $0x98] sm:$0xff]  ;;  %v2092_v26 = vld [vmem:[#allocation2 + $0x90] sm:$0xff]  ;;  %v386_v31 = vld [vmem:[#allocation2 + $0x8] sm:$0xff] }
  0x6e   : > { %403 = vst.msk [vmem:[#allocation3 + $0x10] sm:$0xff] %vm320_vm1, %v611_v20  ;;  %v2088_v23 = vld [vmem:[#allocation2 + $0xb2] sm:$0xff]  ;;  %v2117_v34 = vld [vmem:[#allocation2 + $0x60] sm:$0xff] }
  0x6f   : > { %414 = vst.msk [vmem:[#allocation3 + $0x68] sm:$0xff] %vm320_vm1, %v2081_v21  ;;  %v2102_v28 = vld [vmem:[#allocation2 + $0x38] sm:$0xff]  ;;  %v2106_v30 = vld [vmem:[#allocation2 + $0xb0] sm:$0xff]  ;;  %v2128_v38 = vld [vmem:[#allocation2 + $0x80] sm:$0xff] }
  0x70   : > { %413 = vst.msk [vmem:[#allocation3 + $0x60] sm:$0xff] %vm320_vm1, %v2092_v26 }
  0x71   : > { %463 = vrot.lane.b32.xlu1 %v1972_v42, %s1684_s15  ;;  %461 = vrot.lane.b32.xlu0 %v1974_v43, %s1684_s15  ;;  %401 = vst.msk [vmem:[#allocation3] sm:$0xff] %vm320_vm1, %v385_v27  ;;  %v2151_v27 = vld [vmem:[#allocation2 + $0xc0] sm:$0xff] }
  0x72   : > { %465 = vrot.lane.b32.xlu2 %v1976_v44, %s1684_s15  ;;  %406 = vst.msk [vmem:[#allocation3 + $0x28] sm:$0xff] %vm320_vm1, %v2102_v28 }
  0x73   : > { %416 = vst.msk [vmem:[#allocation3 + $0x78] sm:$0xff] %vm320_vm1, %v2106_v30 }
  0x74   : > { %402 = vst.msk [vmem:[#allocation3 + $0x8] sm:$0xff] %vm320_vm1, %v386_v31  ;;  %v2154_v31 = vld [vmem:[#allocation2 + $0xc8] sm:$0xff] }
  0x75   : > { %409 = vst.msk [vmem:[#allocation3 + $0x40] sm:$0xff] %vm320_vm1, %v2117_v34 }
  0x76   : > { %412 = vst.msk [vmem:[#allocation3 + $0x58] sm:$0xff] %vm320_vm1, %v2128_v38 }
  0x79   : > { %469 = vrot.lane.b32.xlu1 %v1984_v46, %s1684_s15  ;;  %467 = vrot.lane.b32.xlu0 %v1986_v47, %s1684_s15 }
  0x7a   : > { %471 = vrot.lane.b32.xlu2 %v1988_v48, %s1684_s15 }
  0x81   : > { %475 = vrot.lane.b32.xlu1 %v1996_v49, %s1684_s15  ;;  %473 = vrot.lane.b32.xlu0 %v1998_v50, %s1684_s15 }
  0x82   : > { %477 = vrot.lane.b32.xlu2 %v2000_v51, %s1684_s15 }
  0x89   : > { %546 = vrot.lane.b32.xlu1 %v514_v52, %s1685_s22  ;;  %479 = vrot.lane.b32.xlu0 %v2008_v53, %s1684_s15  ;;  %v2139_v52 = vld [vmem:[#allocation2 + $0xa8] sm:$0xff] }
  0x8a   : > { %548 = vrot.lane.b32.xlu2 %v515_v54, %s1685_s22  ;;  %415 = vst.msk [vmem:[#allocation3 + $0x70] sm:$0xff] %vm320_vm1, %v2139_v52 }
  0x91   : > { %552 = vrot.lane.b32.xlu1 %v2014_v55, %s1685_s22  ;;  %550 = vrot.lane.b32.xlu0 %v2016_v56, %s1685_s22 }
  0x92   : > { %554 = vrot.lane.b32.xlu2 %v2018_v57, %s1685_s22 }
  0x99   : > { %558 = vrot.lane.b32.xlu1 %v2030_v59, %s1685_s22  ;;  %556 = vrot.lane.b32.xlu0 %v2032_v60, %s1685_s22 }
  0x9a   : > { %560 = vrot.lane.b32.xlu2 %v2034_v61, %s1685_s22 }
  0xa1   : > { %564 = vrot.lane.b32.xlu1 %v2047_v0, %s1685_s22  ;;  %562 = vrot.lane.b32.xlu0 %v2049_v5, %s1685_s22 }
  0xa2   : > { %566 = vrot.lane.b32.xlu2 %v2051_v8, %s1685_s22 }
  0xa9   : > { %570 = vrot.lane.b32.xlu1 %v2067_v14, %s1685_s22  ;;  %568 = vrot.lane.b32.xlu0 %v2069_v15, %s1685_s22 }
  0xaa   : > { %572 = vrot.lane.b32.xlu2 %v2071_v17, %s1685_s22 }
  0xb1   : > { %576 = vrot.lane.b32.xlu1 %v2088_v23, %s1685_s22  ;;  %574 = vrot.lane.b32.xlu0 %v2090_v24, %s1685_s22 }
  0xb2   : > { %643 = vrot.lane.b32.xlu2 %v611_v20, %s1686_s25 }
  0xb9   : > { %647 = vrot.lane.b32.xlu1 %v2024_v58, %s1686_s25  ;;  %645 = vrot.lane.b32.xlu0 %v612_v62, %s1686_s25 }
  0xba   : > { %649 = vrot.lane.b32.xlu2 %v2102_v28, %s1686_s25 }
  0xbc   : > { %v458_v32 = vpop.permute.xlu2 %457 }
  0xbd   : > { %502 = vst.msk [vmem:[#allocation3 + $0x20] sm:$0xff] %vm497_vm2, %v458_v32 }
  0xc1   : > { %653 = vrot.lane.b32.xlu1 %v2040_v63, %s1686_s25  ;;  %651 = vrot.lane.b32.xlu0 %v2053_v10, %s1686_s25 }
  0xc2   : > { %655 = vrot.lane.b32.xlu2 %v2117_v34, %s1686_s25 }
  0xc4   : > { %v460_v35 = vpop.permute.xlu2 %459 }
  0xc5   : > { %503 = vst.msk [vmem:[#allocation3 + $0x28] sm:$0xff] %vm497_vm2, %v460_v35 }
  0xc9   : > { %659 = vrot.lane.b32.xlu1 %v2059_v12, %s1686_s25  ;;  %657 = vrot.lane.b32.xlu0 %v2073_v18, %s1686_s25 }
  0xca   : > { %661 = vrot.lane.b32.xlu2 %v2128_v38, %s1686_s25 }
  0xcc   : > { %v466_v39 = vpop.permute.xlu2 %465 }
  0xcd   : > { %506 = vst.msk [vmem:[#allocation3 + $0x40] sm:$0xff] %vm497_vm2, %v466_v39 }
  0xd1   : > { %665 = vrot.lane.b32.xlu1 %v2081_v21, %s1686_s25  ;;  %663 = vrot.lane.b32.xlu0 %v2092_v26, %s1686_s25 }
  0xd2   : > { %667 = vrot.lane.b32.xlu2 %v2139_v52, %s1686_s25 }
  0xd3   : > { %v454_v54 = vpop.permute.xlu1 %453  ;;  %v450_v62 = vpop.permute.xlu0 %449 }
  0xd4   : > { %500 = vst.msk [vmem:[#allocation3 + $0x10] sm:$0xff] %vm497_vm2, %v454_v54  ;;  %v472_v20 = vpop.permute.xlu2 %471 }
  0xd5   : > { %498 = vst.msk [vmem:[#allocation3] sm:$0xff] %vm497_vm2, %v450_v62 }
  0xd6   : > { %509 = vst.msk [vmem:[#allocation3 + $0x58] sm:$0xff] %vm497_vm2, %v472_v20 }
  0xd9   : > { %671 = vrot.lane.b32.xlu1 %v2151_v27, %s1686_s25  ;;  %669 = vrot.lane.b32.xlu0 %v2106_v30, %s1686_s25 }
  0xda   : > { %673 = vrot.lane.b32.xlu2 %v2154_v31, %s1686_s25 }
  0xdb   : > { %v456_v32 = vpop.permute.xlu1 %455  ;;  %v452_v35 = vpop.permute.xlu0 %451 }
  0xdc   : > { %501 = vst.msk [vmem:[#allocation3 + $0x18] sm:$0xff] %vm497_vm2, %v456_v32  ;;  %v478_v39 = vpop.permute.xlu2 %477 }
  0xdd   : > { %499 = vst.msk [vmem:[#allocation3 + $0x8] sm:$0xff] %vm497_vm2, %v452_v35 }
  0xde   : > { %512 = vst.msk [vmem:[#allocation3 + $0x70] sm:$0xff] %vm497_vm2, %v478_v39 }
  0xe1   : > { %742 = vrot.lane.b32.xlu1 %v1963_v6, %s1687_s26  ;;  %740 = vrot.lane.b32.xlu0 %v1954_v36, %s1687_s26 }
  0xe2   : > { %744 = vrot.lane.b32.xlu2 %v1959_v1, %s1687_s26 }
  0xe3   : > { %v464_v54 = vpop.permute.xlu1 %463  ;;  %v462_v62 = vpop.permute.xlu0 %461 }
  0xe4   : > { %505 = vst.msk [vmem:[#allocation3 + $0x38] sm:$0xff] %vm497_vm2, %v464_v54  ;;  %v549_v20 = vpop.permute.xlu2 %548 }
  0xe5   : > { %504 = vst.msk [vmem:[#allocation3 + $0x30] sm:$0xff] %vm497_vm2, %v462_v62 }
  0xe6   : > { %596 = vst.msk [vmem:[#allocation3 + $0x8] sm:$0xff] %vm594_vm3, %v549_v20 }
  0xe9   : > { %748 = vrot.lane.b32.xlu1 %v1974_v43, %s1687_s26  ;;  %746 = vrot.lane.b32.xlu0 %v1965_v40, %s1687_s26 }
  0xea   : > { %750 = vrot.lane.b32.xlu2 %v1972_v42, %s1687_s26 }
  0xeb   : > { %v470_v36 = vpop.permute.xlu1 %469  ;;  %v468_v6 = vpop.permute.xlu0 %467 }
  0xec   : > { %508 = vst.msk [vmem:[#allocation3 + $0x50] sm:$0xff] %vm497_vm2, %v470_v36  ;;  %v555_v32 = vpop.permute.xlu2 %554 }
  0xed   : > { %507 = vst.msk [vmem:[#allocation3 + $0x48] sm:$0xff] %vm497_vm2, %v468_v6 }
  0xee   : > { %599 = vst.msk [vmem:[#allocation3 + $0x20] sm:$0xff] %vm594_vm3, %v555_v32 }
  0xf1   : > { %754 = vrot.lane.b32.xlu1 %v1986_v47, %s1687_s26  ;;  %752 = vrot.lane.b32.xlu0 %v1976_v44, %s1687_s26 }
  0xf2   : > { %756 = vrot.lane.b32.xlu2 %v1984_v46, %s1687_s26 }
  0xf3   : > { %v476_v35 = vpop.permute.xlu1 %475  ;;  %v474_v39 = vpop.permute.xlu0 %473 }
  0xf4   : > { %511 = vst.msk [vmem:[#allocation3 + $0x68] sm:$0xff] %vm497_vm2, %v476_v35  ;;  %v561_v54 = vpop.permute.xlu2 %560 }
  0xf5   : > { %510 = vst.msk [vmem:[#allocation3 + $0x60] sm:$0xff] %vm497_vm2, %v474_v39 }
  0xf6   : > { %602 = vst.msk [vmem:[#allocation3 + $0x38] sm:$0xff] %vm594_vm3, %v561_v54 }
  0xf9   : > { %760 = vrot.lane.b32.xlu1 %v1998_v50, %s1687_s26  ;;  %758 = vrot.lane.b32.xlu0 %v1988_v48, %s1687_s26 }
  0xfa   : > { %762 = vrot.lane.b32.xlu2 %v1996_v49, %s1687_s26 }
  0xfb   : > { %v547_v62 = vpop.permute.xlu1 %546  ;;  %v480_v20 = vpop.permute.xlu0 %479 }
  0xfc   : > { %595 = vst.msk [vmem:[#allocation3] sm:$0xff] %vm594_vm3, %v547_v62  ;;  %v567_v36 = vpop.permute.xlu2 %566 }
  0xfd   : > { %513 = vst.msk [vmem:[#allocation3 + $0x78] sm:$0xff] %vm497_vm2, %v480_v20  ;;  %v2218_v20 = vld [vmem:[#allocation2 + $0xc1] sm:$0xff] }
  0xfe   : > { %605 = vst.msk [vmem:[#allocation3 + $0x50] sm:$0xff] %vm594_vm3, %v567_v36 }
 0x101   : > { %766 = vrot.lane.b32.xlu1 %v2008_v53, %s1687_s26  ;;  %764 = vrot.lane.b32.xlu0 %v2000_v51, %s1687_s26 }
 0x102   : > { %853 = vrot.lane.b32.xlu2 %v2051_v8, %s1688_s27 }
 0x103   : > { %v553_v6 = vpop.permute.xlu1 %552  ;;  %v551_v32 = vpop.permute.xlu0 %550 }
 0x104   : > { %598 = vst.msk [vmem:[#allocation3 + $0x18] sm:$0xff] %vm594_vm3, %v553_v6  ;;  %v573_v35 = vpop.permute.xlu2 %572  ;;  %v2229_v6 = vld [vmem:[#allocation2 + $0xc2] sm:$0xff] }
 0x105   : > { %597 = vst.msk [vmem:[#allocation3 + $0x10] sm:$0xff] %vm594_vm3, %v551_v32 }
 0x106   : > { %608 = vst.msk [vmem:[#allocation3 + $0x68] sm:$0xff] %vm594_vm3, %v573_v35 }
 0x109   : > { %951 = vrot.lane.b32.xlu1 %v2092_v26, %s1689_s28  ;;  %861 = vrot.lane.b32.xlu0 %v2090_v24, %s1688_s27 }
 0x10a   : > { %959 = vrot.lane.b32.xlu2 %v2151_v27, %s1689_s28 }
 0x10b   : > { %v559_v39 = vpop.permute.xlu1 %558  ;;  %v557_v54 = vpop.permute.xlu0 %556 }
 0x10c   : > { %601 = vst.msk [vmem:[#allocation3 + $0x30] sm:$0xff] %vm594_vm3, %v559_v39  ;;  %v644_v62 = vpop.permute.xlu2 %643 }
 0x10d   : > { %600 = vst.msk [vmem:[#allocation3 + $0x28] sm:$0xff] %vm594_vm3, %v557_v54 }
 0x10e   : > { %692 = vst.msk [vmem:[#allocation3] sm:$0xff] %vm691_vm4, %v644_v62 }
 0x111   : > { %1056 = vrot.lane.b32.xlu1 %v2218_v20, %s1690_s29  ;;  %1048 = vrot.lane.b32.xlu0 %v1998_v50, %s1690_s29 }
 0x112   : > { %1145 = vrot.lane.b32.xlu2 %v2067_v14, %s1691_s30 }
 0x113   : > { %v565_v26 = vpop.permute.xlu1 %564  ;;  %v563_v36 = vpop.permute.xlu0 %562 }
 0x114   : > { %604 = vst.msk [vmem:[#allocation3 + $0x48] sm:$0xff] %vm594_vm3, %v565_v26  ;;  %v650_v27 = vpop.permute.xlu2 %649 }
 0x115   : > { %603 = vst.msk [vmem:[#allocation3 + $0x40] sm:$0xff] %vm594_vm3, %v563_v36  ;;  %v2268_v36 = vld [vmem:[#allocation2 + $0xc9] sm:$0xff] }
 0x116   : > { %695 = vst.msk [vmem:[#allocation3 + $0x18] sm:$0xff] %vm691_vm4, %v650_v27 }
 0x119   : > { %837 = vrot.lane.b32.xlu1 %v2016_v56, %s1688_s27  ;;  %1153 = vrot.lane.b32.xlu0 %v2229_v6, %s1691_s30 }
 0x11a   : > { %845 = vrot.lane.b32.xlu2 %v2030_v59, %s1688_s27 }
 0x11b   : > { %v571_v50 = vpop.permute.xlu1 %570  ;;  %v569_v32 = vpop.permute.xlu0 %568 }
 0x11c   : > { %607 = vst.msk [vmem:[#allocation3 + $0x60] sm:$0xff] %vm594_vm3, %v571_v50  ;;  %v656_v35 = vpop.permute.xlu2 %655  ;;  %v2278_v50 = vld [vmem:[#allocation2 + $0xca] sm:$0xff] }
 0x11d   : > { %606 = vst.msk [vmem:[#allocation3 + $0x58] sm:$0xff] %vm594_vm3, %v569_v32 }
 0x11e   : > { %698 = vst.msk [vmem:[#allocation3 + $0x30] sm:$0xff] %vm691_vm4, %v656_v35 }
 0x121   : > { %943 = vrot.lane.b32.xlu1 %v2117_v34, %s1689_s28  ;;  %935 = vrot.lane.b32.xlu0 %v2024_v58, %s1689_s28 }
 0x122   : > { %855 = vrot.lane.b32.xlu2 %v2069_v15, %s1688_s27 }
 0x123   : > { %v577_v56 = vpop.permute.xlu1 %576  ;;  %v575_v39 = vpop.permute.xlu0 %574 }
 0x124   : > { %610 = vst.msk [vmem:[#allocation3 + $0x78] sm:$0xff] %vm594_vm3, %v577_v56  ;;  %v662_v54 = vpop.permute.xlu2 %661 }
 0x125   : > { %609 = vst.msk [vmem:[#allocation3 + $0x70] sm:$0xff] %vm594_vm3, %v575_v39 }
 0x126   : > { %701 = vst.msk [vmem:[#allocation3 + $0x48] sm:$0xff] %vm691_vm4, %v662_v54 }
 0x129   : > { %1032 = vrot.lane.b32.xlu1 %v1959_v1, %s1690_s29  ;;  %863 = vrot.lane.b32.xlu0 %v2088_v23, %s1688_s27 }
 0x12a   : > { %1040 = vrot.lane.b32.xlu2 %v1976_v44, %s1690_s29 }
 0x12b   : > { %v648_v34 = vpop.permute.xlu1 %647  ;;  %v646_v58 = vpop.permute.xlu0 %645 }
 0x12c   : > { %694 = vst.msk [vmem:[#allocation3 + $0x10] sm:$0xff] %vm691_vm4, %v648_v34  ;;  %v668_v62 = vpop.permute.xlu2 %667  ;;  %v917_v34 = vld [vmem:[#allocation2 + $0xd8] sm:$0xff] }
 0x12d   : > { %693 = vst.msk [vmem:[#allocation3 + $0x8] sm:$0xff] %vm691_vm4, %v646_v58  ;;  %v1014_v58 = vld [vmem:[#allocation2 + $0xd9] sm:$0xff] }
 0x12e   : > { %704 = vst.msk [vmem:[#allocation3 + $0x60] sm:$0xff] %vm691_vm4, %v668_v62  ;;  %v1214_v62 = vld [vmem:[%s2579_s3 + $0x20] sm:$0xf] }
 0x12f   : > { %1574 = vmatpush.msk.msra.mxu2 %vm1264_vm7, %v1214_v62  ;;  %1575 = vmatpush.msk.msra.mxu3 %vm1264_vm7, %v1214_v62 }
 0x130   : > { %1551 = vmatpush.msk.msra.mxu0 %vm1264_vm7, %v1214_v62  ;;  %1573 = vmatpush.msk.msra.mxu1 %vm1264_vm7, %v1214_v62 }
 0x131   : > { %961 = vrot.lane.b32.xlu1 %v2154_v31, %s1689_s28  ;;  %953 = vrot.lane.b32.xlu0 %v2081_v21, %s1689_s28 }
 0x132   : > { %1129 = vrot.lane.b32.xlu2 %v2018_v57, %s1691_s30 }
 0x133   : > { %v654_v1 = vpop.permute.xlu1 %653  ;;  %v652_v26 = vpop.permute.xlu0 %651 }
 0x134   : > { %697 = vst.msk [vmem:[#allocation3 + $0x28] sm:$0xff] %vm691_vm4, %v654_v1  ;;  %v674_v44 = vpop.permute.xlu2 %673 }
 0x135   : > { %696 = vst.msk [vmem:[#allocation3 + $0x20] sm:$0xff] %vm691_vm4, %v652_v26 }
 0x136   : > { %707 = vst.msk [vmem:[#allocation3 + $0x78] sm:$0xff] %vm691_vm4, %v674_v44  ;;  %v1213_v44 = vld [vmem:[%s2579_s3 + $0x18] sm:$0xff] }
 0x137   : > { %1577 = vmatpush.msra.mxu2 %v1213_v44  ;;  %1578 = vmatpush.msra.mxu3 %v1213_v44 }
 0x138   : > { %1280 = vmatpush.msra.mxu0 %v1213_v44  ;;  %1576 = vmatpush.msra.mxu1 %v1213_v44 }
 0x139   : > { %1050 = vrot.lane.b32.xlu1 %v1996_v49, %s1690_s29  ;;  %1137 = vrot.lane.b32.xlu0 %v2049_v5, %s1691_s30 }
 0x13a   : > { %1058 = vrot.lane.b32.xlu2 %v2268_v36, %s1690_s29 }
 0x13b   : > { %v660_v21 = vpop.permute.xlu1 %659  ;;  %v658_v31 = vpop.permute.xlu0 %657 }
 0x13c   : > { %700 = vst.msk [vmem:[#allocation3 + $0x40] sm:$0xff] %vm691_vm4, %v660_v21  ;;  %v745_v27 = vpop.permute.xlu2 %744  ;;  %v1212_v21 = vld [vmem:[%s2579_s3 + $0x10] sm:$0xff] }
 0x13d   : > { %699 = vst.msk [vmem:[#allocation3 + $0x38] sm:$0xff] %vm691_vm4, %v658_v31  ;;  %v1111_v31 = vld [vmem:[#allocation2 + $0xda] sm:$0xff]  ;;  %1580 = vmatpush.msra.mxu2 %v1212_v21  ;;  %1581 = vmatpush.msra.mxu3 %v1212_v21 }
 0x13e   : > { %791 = vst.msk [vmem:[#allocation3 + $0x10] sm:$0xff] %vm788_vm5, %v745_v27  ;;  %1281 = vmatpush.msra.mxu0 %v1212_v21  ;;  %v1210_v27 = vld [vmem:[%s2579_s3] sm:$0xff]  ;;  %1579 = vmatpush.msra.mxu1 %v1212_v21 }
 0x141   : > { %1155 = vrot.lane.b32.xlu1 %v2278_v50, %s1691_s30  ;;  %1147 = vrot.lane.b32.xlu0 %v2071_v17, %s1691_s30 }
 0x142   : > { %839 = vrot.lane.b32.xlu2 %v2014_v55, %s1688_s27 }
 0x143   : > { %v666_v49 = vpop.permute.xlu1 %665  ;;  %v664_v32 = vpop.permute.xlu0 %663 }
 0x144   : > { %703 = vst.msk [vmem:[#allocation3 + $0x58] sm:$0xff] %vm691_vm4, %v666_v49  ;;  %v751_v35 = vpop.permute.xlu2 %750 }
 0x145   : > { %702 = vst.msk [vmem:[#allocation3 + $0x50] sm:$0xff] %vm691_vm4, %v664_v32 }
 0x146   : > { %794 = vst.msk [vmem:[#allocation3 + $0x28] sm:$0xff] %vm788_vm5, %v751_v35 }
 0x149   : > { %768 = vrot.lane.b32.xlu1 %v2218_v20, %s1687_s26  ;;  %847 = vrot.lane.b32.xlu0 %v2034_v61, %s1688_s27 }
 0x14a   : > { %937 = vrot.lane.b32.xlu2 %v2102_v28, %s1689_s28 }
 0x14b   : > { %v672_v56 = vpop.permute.xlu1 %671  ;;  %v670_v39 = vpop.permute.xlu0 %669 }
 0x14c   : > { %706 = vst.msk [vmem:[#allocation3 + $0x70] sm:$0xff] %vm691_vm4, %v672_v56  ;;  %v757_v55 = vpop.permute.xlu2 %756 }
 0x14d   : > { %705 = vst.msk [vmem:[#allocation3 + $0x68] sm:$0xff] %vm691_vm4, %v670_v39  ;;  %v918_v39 = vld [vmem:[#allocation2 + $0xe0] sm:$0xff] }
 0x14e   : > { %797 = vst.msk [vmem:[#allocation3 + $0x40] sm:$0xff] %vm788_vm5, %v757_v55 }
 0x151   : > { %857 = vrot.lane.b32.xlu1 %v2067_v14, %s1688_s27  ;;  %945 = vrot.lane.b32.xlu0 %v2073_v18, %s1689_s28 }
 0x152   : > { %865 = vrot.lane.b32.xlu2 %v2229_v6, %s1688_s27 }
 0x153   : > { %v743_v20 = vpop.permute.xlu1 %742  ;;  %v741_v54 = vpop.permute.xlu0 %740 }
 0x154   : > { %790 = vst.msk [vmem:[#allocation3 + $0x8] sm:$0xff] %vm788_vm5, %v743_v20  ;;  %v763_v28 = vpop.permute.xlu2 %762 }
 0x155   : > { %789 = vst.msk [vmem:[#allocation3] sm:$0xff] %vm788_vm5, %v741_v54 }
 0x156   : > { %800 = vst.msk [vmem:[#allocation3 + $0x58] sm:$0xff] %vm788_vm5, %v763_v28  ;;  %v1015_v28 = vld [vmem:[#allocation2 + $0xe1] sm:$0xff] }
 0x159   : > { %1042 = vrot.lane.b32.xlu1 %v1986_v47, %s1690_s29  ;;  %1034 = vrot.lane.b32.xlu0 %v1965_v40, %s1690_s29 }
 0x15a   : > { %955 = vrot.lane.b32.xlu2 %v2139_v52, %s1689_s28 }
 0x15b   : > { %v749_v14 = vpop.permute.xlu1 %748  ;;  %v747_v18 = vpop.permute.xlu0 %746 }
 0x15c   : > { %793 = vst.msk [vmem:[#allocation3 + $0x20] sm:$0xff] %vm788_vm5, %v749_v14  ;;  %v854_v6 = vpop.permute.xlu2 %853 }
 0x15d   : > { %792 = vst.msk [vmem:[#allocation3 + $0x18] sm:$0xff] %vm788_vm5, %v747_v18 }
 0x15e   : > { %894 = vst.msk [vmem:[#allocation3 + $0x40] sm:$0xff] %vm885_vm6, %v854_v6 }
 0x161   : > { %1131 = vrot.lane.b32.xlu1 %v2032_v60, %s1691_s30  ;;  %963 = vrot.lane.b32.xlu0 %v917_v34, %s1689_s28 }
 0x162   : > { %1139 = vrot.lane.b32.xlu2 %v2047_v0, %s1691_s30 }
 0x163   : > { %v755_v40 = vpop.permute.xlu1 %754  ;;  %v753_v47 = vpop.permute.xlu0 %752 }
 0x164   : > { %796 = vst.msk [vmem:[#allocation3 + $0x38] sm:$0xff] %vm788_vm5, %v755_v40  ;;  %v960_v52 = vpop.permute.xlu2 %959 }
 0x165   : > { %795 = vst.msk [vmem:[#allocation3 + $0x30] sm:$0xff] %vm788_vm5, %v753_v47 }
 0x169   : > { %1060 = vrot.lane.b32.xlu1 %v1014_v58, %s1690_s29  ;;  %1052 = vrot.lane.b32.xlu0 %v2000_v51, %s1690_s29 }
 0x16a   : > { %1149 = vrot.lane.b32.xlu2 %v2090_v24, %s1691_s30  ;;  %v1211_v24 = vld [vmem:[%s2579_s3 + $0x8] sm:$0xff] }
 0x16b   : > { %v761_v1 = vpop.permute.xlu1 %760  ;;  %v759_v26 = vpop.permute.xlu0 %758  ;;  %1583 = vmatpush.msra.mxu2 %v1211_v24  ;;  %1584 = vmatpush.msra.mxu3 %v1211_v24 }
 0x16c   : > { %799 = vst.msk [vmem:[#allocation3 + $0x50] sm:$0xff] %vm788_vm5, %v761_v1  ;;  %v1146_v51 = vpop.permute.xlu2 %1145  ;;  %1282 = vmatpush.msra.mxu0 %v1211_v24  ;;  %1582 = vmatpush.msra.mxu1 %v1211_v24 }
 0x16d   : > { %798 = vst.msk [vmem:[#allocation3 + $0x48] sm:$0xff] %vm788_vm5, %v759_v26  ;;  %1586 = vmatpush.msra.mxu2 %v1210_v27  ;;  %1587 = vmatpush.msra.mxu3 %v1210_v27 }
 0x16e   : > { %1283 = vmatpush.msra.mxu0 %v1210_v27  ;;  %1585 = vmatpush.msra.mxu1 %v1210_v27 }
 0x171   : > { %841 = vrot.lane.b32.xlu1 %v2018_v57, %s1688_s27  ;;  %1157 = vrot.lane.b32.xlu0 %v1111_v31, %s1691_s30 }
 0x172   : > { %849 = vrot.lane.b32.xlu2 %v2049_v5, %s1688_s27 }
 0x173   : > { %v767_v49 = vpop.permute.xlu1 %766  ;;  %v765_v32 = vpop.permute.xlu0 %764 }
 0x174   : > { %802 = vst.msk [vmem:[#allocation3 + $0x68] sm:$0xff] %vm788_vm5, %v767_v49  ;;  %v846_v57 = vpop.permute.xlu2 %845 }
 0x175   : > { %801 = vst.msk [vmem:[#allocation3 + $0x60] sm:$0xff] %vm788_vm5, %v765_v32 }
 0x176   : > { %890 = vst.msk [vmem:[#allocation3 + $0x20] sm:$0xff] %vm885_vm6, %v846_v57 }
 0x179   : > { %939 = vrot.lane.b32.xlu1 %v2053_v10, %s1689_s28  ;;  %770 = vrot.lane.b32.xlu0 %v2268_v36, %s1687_s26 }
 0x17a   : > { %947 = vrot.lane.b32.xlu2 %v2059_v12, %s1689_s28 }
 0x17b   : > { %v952_v5 = vpop.permute.xlu1 %951  ;;  %v862_v35 = vpop.permute.xlu0 %861 }
 0x17c   : > { %992 = vst.msk [vmem:[#allocation3 + $0x40] sm:$0xff] %vm983_vm8, %v952_v5  ;;  %v856_v56 = vpop.permute.xlu2 %855 }
 0x17d   : > { %898 = vst.msk [vmem:[#allocation3 + $0x60] sm:$0xff] %vm885_vm6, %v862_v35 }
 0x17e   : > { %996 = vst.msk [vmem:[#allocation3 + $0x60] sm:$0xff] %vm983_vm8, %v960_v52 }
 0x17f   : > { %895 = vst.msk [vmem:[#allocation3 + $0x48] sm:$0xff] %vm885_vm6, %v856_v56 }
 0x181   : > { %867 = vrot.lane.b32.xlu1 %v2278_v50, %s1688_s27  ;;  %859 = vrot.lane.b32.xlu0 %v2071_v17, %s1688_s27 }
 0x182   : > { %1036 = vrot.lane.b32.xlu2 %v1974_v43, %s1690_s29 }
 0x183   : > { %v1057_v10 = vpop.permute.xlu1 %1056  ;;  %v1049_v36 = vpop.permute.xlu0 %1048 }
 0x184   : > { %1093 = vst.msk [vmem:[#allocation3 + $0x60] sm:$0xff] %vm1080_vm9, %v1057_v10  ;;  %v1041_v12 = vpop.permute.xlu2 %1040 }
 0x185   : > { %1089 = vst.msk [vmem:[#allocation3 + $0x40] sm:$0xff] %vm1080_vm9, %v1049_v36 }
 0x186   : > { %1186 = vst.msk [vmem:[#allocation3 + $0x40] sm:$0xff] %vm1177_vm10, %v1146_v51 }
 0x189   : > { %957 = vrot.lane.b32.xlu1 %v2106_v30, %s1689_s28  ;;  %1044 = vrot.lane.b32.xlu0 %v1984_v46, %s1690_s29 }
 0x18a   : > { %965 = vrot.lane.b32.xlu2 %v918_v39, %s1689_s28 }
 0x18b   : > { %v838_v17 = vpop.permute.xlu1 %837  ;;  %v1154_v50 = vpop.permute.xlu0 %1153 }
 0x18c   : > { %886 = vst.msk [vmem:[#allocation3] sm:$0xff] %vm885_vm6, %v838_v17  ;;  %v1130_v55 = vpop.permute.xlu2 %1129 }
 0x18d   : > { %1190 = vst.msk [vmem:[#allocation3 + $0x60] sm:$0xff] %vm1177_vm10, %v1154_v50  ;;  %v1202_v43 = vld [vmem:[#allocation3 + $0x40] sm:$0xff] }
 0x18e   : > { %1560 = vmatmul.msk.f32.vlgmr.msra.gmra.mxu2 %vm1215_vm11, %v1202_v43 }
 0x191   : > { %1141 = vrot.lane.b32.xlu1 %v2051_v8, %s1691_s30  ;;  %1133 = vrot.lane.b32.xlu0 %v2030_v59, %s1691_s30  ;;  %v1112_v8 = vld [vmem:[#allocation2 + $0xe2] sm:$0xff] }
 0x192   : > { %1054 = vrot.lane.b32.xlu2 %v2008_v53, %s1690_s29 }
 0x193   : > { %v944_v46 = vpop.permute.xlu1 %943  ;;  %v936_v30 = vpop.permute.xlu0 %935 }
 0x194   : > { %988 = vst.msk [vmem:[#allocation3 + $0x20] sm:$0xff] %vm983_vm8, %v944_v46  ;;  %v1206_v20 = vld [vmem:[#allocation3 + $0x60] sm:$0xff]  ;;  %v1059_v54 = vpop.permute.xlu2 %1058 }
 0x195   : > { %984 = vst.msk [vmem:[#allocation3] sm:$0xff] %vm983_vm8, %v936_v30  ;;  %1564 = vmatmul.msk.f32.vlgmr.msra.gmra.mxu3 %vm1215_vm11, %v1206_v20 }
 0x196   : > { %1085 = vst.msk [vmem:[#allocation3 + $0x20] sm:$0xff] %vm1080_vm9, %v1041_v12 }
 0x199   : > { %1151 = vrot.lane.b32.xlu1 %v2088_v23, %s1691_s30  ;;  %1062 = vrot.lane.b32.xlu0 %v1015_v28, %s1690_s29 }
 0x19a   : > { %1159 = vrot.lane.b32.xlu2 %v1112_v8, %s1691_s30 }
 0x19b   : > { %v1033_v59 = vpop.permute.xlu1 %1032  ;;  %v864_v14 = vpop.permute.xlu0 %863 }
 0x19c   : > { %1081 = vst.msk [vmem:[#allocation3] sm:$0xff] %vm1080_vm9, %v1033_v59  ;;  %v840_v53 = vpop.permute.xlu2 %839 }
 0x19d   : > { %899 = vst.msk [vmem:[#allocation3 + $0x68] sm:$0xff] %vm885_vm6, %v864_v14 }
 0x19e   : > { %1178 = vst.msk [vmem:[#allocation3] sm:$0xff] %vm1177_vm10, %v1130_v55 }
 0x19f   : > { %887 = vst.msk [vmem:[#allocation3 + $0x8] sm:$0xff] %vm885_vm6, %v840_v53 }
 0x1a1   : > { %851 = vrot.lane.b32.xlu1 %v2047_v0, %s1688_s27  ;;  %843 = vrot.lane.b32.xlu0 %v2032_v60, %s1688_s27 }
 0x1a2   : > { %941 = vrot.lane.b32.xlu2 %v2040_v63, %s1689_s28 }
 0x1a3   : > { %v962_v23 = vpop.permute.xlu1 %961  ;;  %v954_v18 = vpop.permute.xlu0 %953 }
 0x1a4   : > { %997 = vst.msk [vmem:[#allocation3 + $0x68] sm:$0xff] %vm983_vm8, %v962_v23  ;;  %v938_v34 = vpop.permute.xlu2 %937 }
 0x1a5   : > { %993 = vst.msk [vmem:[#allocation3 + $0x48] sm:$0xff] %vm983_vm8, %v954_v18  ;;  %v1194_v6 = vld [vmem:[#allocation3] sm:$0xff] }
 0x1a6   : > { %1094 = vst.msk [vmem:[#allocation3 + $0x68] sm:$0xff] %vm1080_vm9, %v1059_v54  ;;  %1552 = vmatmul.msk.f32.vlgmr.msra.gmra.mxu0 %vm1215_vm11, %v1194_v6 }
 0x1a7   : > { %985 = vst.msk [vmem:[#allocation3 + $0x8] sm:$0xff] %vm983_vm8, %v938_v34 }
 0x1a9   : > { %1038 = vrot.lane.b32.xlu1 %v1972_v42, %s1690_s29  ;;  %949 = vrot.lane.b32.xlu0 %v2128_v38, %s1689_s28 }
 0x1aa   : > { %1046 = vrot.lane.b32.xlu2 %v1988_v48, %s1690_s29 }
 0x1ab   : > { %v1051_v60 = vpop.permute.xlu1 %1050  ;;  %v1138_v63 = vpop.permute.xlu0 %1137 }
 0x1ac   : > { %1090 = vst.msk [vmem:[#allocation3 + $0x48] sm:$0xff] %vm1080_vm9, %v1051_v60  ;;  %v866_v0 = vpop.permute.xlu2 %865 }
 0x1ad   : > { %1182 = vst.msk [vmem:[#allocation3 + $0x20] sm:$0xff] %vm1177_vm10, %v1138_v63 }
 0x1b1   : > { %1143 = vrot.lane.b32.xlu1 %v2069_v15, %s1691_s30  ;;  %1135 = vrot.lane.b32.xlu0 %v2034_v61, %s1691_s30 }
 0x1b3   : > { %v1156_v42 = vpop.permute.xlu1 %1155  ;;  %v1148_v40 = vpop.permute.xlu0 %1147 }
 0x1b4   : > { %1191 = vst.msk [vmem:[#allocation3 + $0x68] sm:$0xff] %vm1177_vm10, %v1156_v42  ;;  %v1198_v38 = vld [vmem:[#allocation3 + $0x20] sm:$0xff]  ;;  %v956_v48 = vpop.permute.xlu2 %955 }
 0x1b5   : > { %1187 = vst.msk [vmem:[#allocation3 + $0x48] sm:$0xff] %vm1177_vm10, %v1148_v40  ;;  %1556 = vmatmul.msk.f32.vlgmr.msra.gmra.mxu1 %vm1215_vm11, %v1198_v38 }
 0x1bb   : > { %v769_v47 = vpop.permute.xlu1 %768  ;;  %v848_v52 = vpop.permute.xlu0 %847  ;;  %v1207_v58 = vld [vmem:[#allocation3 + $0x68] sm:$0xff] }
 0x1bc   : > { %803 = vst.msk [vmem:[#allocation3 + $0x70] sm:$0xff] %vm788_vm5, %v769_v47  ;;  %1565 = vmatmul.msk.f32.gmra.mxu3 %vm1215_vm11, %v1207_v58  ;;  %v1203_v15 = vld [vmem:[#allocation3 + $0x48] sm:$0xff]  ;;  %v1140_v61 = vpop.permute.xlu2 %1139 }
 0x1bd   : > { %891 = vst.msk [vmem:[#allocation3 + $0x28] sm:$0xff] %vm885_vm6, %v848_v52  ;;  %1561 = vmatmul.msk.f32.gmra.mxu2 %vm1215_vm11, %v1203_v15 }
 0x1be   : > { %900 = vst.msk [vmem:[#allocation3 + $0x70] sm:$0xff] %vm885_vm6, %v866_v0 }
 0x1c3   : > { %v858_v62 = vpop.permute.xlu1 %857  ;;  %v946_v1 = vpop.permute.xlu0 %945 }
 0x1c4   : > { %896 = vst.msk [vmem:[#allocation3 + $0x50] sm:$0xff] %vm885_vm6, %v858_v62  ;;  %v1150_v26 = vpop.permute.xlu2 %1149 }
 0x1c5   : > { %989 = vst.msk [vmem:[#allocation3 + $0x28] sm:$0xff] %vm983_vm8, %v946_v1 }
 0x1c6   : > { %994 = vst.msk [vmem:[#allocation3 + $0x50] sm:$0xff] %vm983_vm8, %v956_v48 }
 0x1cb   : > { %v1043_v44 = vpop.permute.xlu1 %1042  ;;  %v1035_v51 = vpop.permute.xlu0 %1034 }
 0x1cc   : > { %1086 = vst.msk [vmem:[#allocation3 + $0x28] sm:$0xff] %vm1080_vm9, %v1043_v44  ;;  %v850_v21 = vpop.permute.xlu2 %849 }
 0x1cd   : > { %1082 = vst.msk [vmem:[#allocation3 + $0x8] sm:$0xff] %vm1080_vm9, %v1035_v51 }
 0x1ce   : > { %1183 = vst.msk [vmem:[#allocation3 + $0x28] sm:$0xff] %vm1177_vm10, %v1140_v61 }
 0x1cf   : > { %892 = vst.msk [vmem:[#allocation3 + $0x30] sm:$0xff] %vm885_vm6, %v850_v21 }
 0x1d3   : > { %v1132_v24 = vpop.permute.xlu1 %1131  ;;  %v964_v31 = vpop.permute.xlu0 %963 }
 0x1d4   : > { %1179 = vst.msk [vmem:[#allocation3 + $0x8] sm:$0xff] %vm1177_vm10, %v1132_v24  ;;  %v948_v49 = vpop.permute.xlu2 %947 }
 0x1d5   : > { %998 = vst.msk [vmem:[#allocation3 + $0x70] sm:$0xff] %vm983_vm8, %v964_v31  ;;  %v1199_v27 = vld [vmem:[#allocation3 + $0x28] sm:$0xff] }
 0x1d6   : > { %1557 = vmatmul.msk.f32.gmra.mxu1 %vm1215_vm11, %v1199_v27  ;;  %990 = vst.msk [vmem:[#allocation3 + $0x30] sm:$0xff] %vm983_vm8, %v948_v49 }
 0x1db   : > { %v1061_v32 = vpop.permute.xlu1 %1060  ;;  %v1053_v57 = vpop.permute.xlu0 %1052  ;;  %v1195_v5 = vld [vmem:[#allocation3 + $0x8] sm:$0xff] }
 0x1dc   : > { %1095 = vst.msk [vmem:[#allocation3 + $0x70] sm:$0xff] %vm1080_vm9, %v1061_v32  ;;  %1553 = vmatmul.msk.f32.gmra.mxu0 %vm1215_vm11, %v1195_v5  ;;  %v1037_v36 = vpop.permute.xlu2 %1036 }
 0x1dd   : > { %1091 = vst.msk [vmem:[#allocation3 + $0x50] sm:$0xff] %vm1080_vm9, %v1053_v57 }
 0x1de   : > { %1188 = vst.msk [vmem:[#allocation3 + $0x50] sm:$0xff] %vm1177_vm10, %v1150_v26 }
 0x1e3   : > { %v842_v35 = vpop.permute.xlu1 %841  ;;  %v1158_v56 = vpop.permute.xlu0 %1157 }
 0x1e4   : > { %888 = vst.msk [vmem:[#allocation3 + $0x10] sm:$0xff] %vm885_vm6, %v842_v35  ;;  %v966_v50 = vpop.permute.xlu2 %965 }
 0x1e5   : > { %1192 = vst.msk [vmem:[#allocation3 + $0x70] sm:$0xff] %vm1177_vm10, %v1158_v56  ;;  %v1204_v10 = vld [vmem:[#allocation3 + $0x50] sm:$0xff] }
 0x1e6   : > { %1562 = vmatmul.msk.f32.gmra.mxu2 %vm1215_vm11, %v1204_v10 }
 0x1eb   : > { %v940_v12 = vpop.permute.xlu1 %939  ;;  %v771_v39 = vpop.permute.xlu0 %770 }
 0x1ec   : > { %986 = vst.msk [vmem:[#allocation3 + $0x10] sm:$0xff] %vm983_vm8, %v940_v12  ;;  %v1208_v17 = vld [vmem:[#allocation3 + $0x70] sm:$0xff]  ;;  %v1055_v46 = vpop.permute.xlu2 %1054 }
 0x1ed   : > { %804 = vst.msk [vmem:[#allocation3 + $0x78] sm:$0xff] %vm788_vm5, %v771_v39  ;;  %1566 = vmatmul.msk.f32.gmra.mxu3 %vm1215_vm11, %v1208_v17 }
 0x1ee   : > { %1083 = vst.msk [vmem:[#allocation3 + $0x10] sm:$0xff] %vm1080_vm9, %v1037_v36 }
 0x1f3   : > { %v868_v43 = vpop.permute.xlu1 %867  ;;  %v860_v55 = vpop.permute.xlu0 %859 }
 0x1f4   : > { %901 = vst.msk [vmem:[#allocation3 + $0x78] sm:$0xff] %vm885_vm6, %v868_v43  ;;  %v1160_v8 = vpop.permute.xlu2 %1159 }
 0x1f5   : > { %897 = vst.msk [vmem:[#allocation3 + $0x58] sm:$0xff] %vm885_vm6, %v860_v55 }
 0x1f6   : > { %999 = vst.msk [vmem:[#allocation3 + $0x78] sm:$0xff] %vm983_vm8, %v966_v50 }
 0x1fb   : > { %v958_v30 = vpop.permute.xlu1 %957  ;;  %v1045_v20 = vpop.permute.xlu0 %1044 }
 0x1fc   : > { %995 = vst.msk [vmem:[#allocation3 + $0x58] sm:$0xff] %vm983_vm8, %v958_v30  ;;  %v942_v18 = vpop.permute.xlu2 %941 }
 0x1fd   : > { %1087 = vst.msk [vmem:[#allocation3 + $0x30] sm:$0xff] %vm1080_vm9, %v1045_v20 }
 0x1fe   : > { %1092 = vst.msk [vmem:[#allocation3 + $0x58] sm:$0xff] %vm1080_vm9, %v1055_v46 }
 0x203   : > { %v1142_v54 = vpop.permute.xlu1 %1141  ;;  %v1134_v28 = vpop.permute.xlu0 %1133 }
 0x204   : > { %1184 = vst.msk [vmem:[#allocation3 + $0x30] sm:$0xff] %vm1177_vm10, %v1142_v54  ;;  %v1047_v0 = vpop.permute.xlu2 %1046 }
 0x205   : > { %1180 = vst.msk [vmem:[#allocation3 + $0x10] sm:$0xff] %vm1177_vm10, %v1134_v28 }
 0x20b   : > { %v1152_v59 = vpop.permute.xlu1 %1151  ;;  %v1063_v14 = vpop.permute.xlu0 %1062  ;;  %v1200_v53 = vld [vmem:[#allocation3 + $0x30] sm:$0xff] }
 0x20c   : > { %1189 = vst.msk [vmem:[#allocation3 + $0x58] sm:$0xff] %vm1177_vm10, %v1152_v59  ;;  %v1196_v23 = vld [vmem:[#allocation3 + $0x10] sm:$0xff]  ;;  %1558 = vmatmul.msk.f32.gmra.mxu1 %vm1215_vm11, %v1200_v53 }
 0x20d   : > { %1096 = vst.msk [vmem:[#allocation3 + $0x78] sm:$0xff] %vm1080_vm9, %v1063_v14  ;;  %1554 = vmatmul.msk.f32.gmra.mxu0 %vm1215_vm11, %v1196_v23 }
 0x20e   : > { %1193 = vst.msk [vmem:[#allocation3 + $0x78] sm:$0xff] %vm1177_vm10, %v1160_v8 }
 0x211   : > { %v1309_v26 = vpop.f32.mrf.mxu2 }
 0x213   : > { %v852_v6 = vpop.permute.xlu1 %851  ;;  %v844_v34 = vpop.permute.xlu0 %843  ;;  %v1205_v60 = vld [vmem:[#allocation3 + $0x58] sm:$0xff] }
 0x214   : > { %893 = vst.msk [vmem:[#allocation3 + $0x38] sm:$0xff] %vm885_vm6, %v852_v6  ;;  %1563 = vmatmul.msk.f32.gmra.mxu2 %vm1215_vm11, %v1205_v60 }
 0x215   : > { %889 = vst.msk [vmem:[#allocation3 + $0x18] sm:$0xff] %vm885_vm6, %v844_v34  ;;  %v1209_v63 = vld [vmem:[#allocation3 + $0x78] sm:$0xff] }
 0x216   : > { %987 = vst.msk [vmem:[#allocation3 + $0x18] sm:$0xff] %vm983_vm8, %v942_v18  ;;  %1567 = vmatmul.msk.f32.gmra.mxu3 %vm1215_vm11, %v1209_v63 }
 0x218   : > { %v1321_v24 = vpop.f32.mrf.mxu3 }
 0x21b   : > { %v1039_v42 = vpop.permute.xlu1 %1038  ;;  %v950_v40 = vpop.permute.xlu0 %949 }
 0x21c   : > { %1084 = vst.msk [vmem:[#allocation3 + $0x18] sm:$0xff] %vm1080_vm9, %v1039_v42 }
 0x21d   : > { %991 = vst.msk [vmem:[#allocation3 + $0x38] sm:$0xff] %vm983_vm8, %v950_v40 }
 0x21e   : > { %1088 = vst.msk [vmem:[#allocation3 + $0x38] sm:$0xff] %vm1080_vm9, %v1047_v0 }
 0x223   : > { %v1144_v38 = vpop.permute.xlu1 %1143  ;;  %v1136_v48 = vpop.permute.xlu0 %1135 }
 0x224   : > { %1185 = vst.msk [vmem:[#allocation3 + $0x38] sm:$0xff] %vm1177_vm10, %v1144_v38  ;;  %v1285_v47 = vpop.f32.mrf.mxu0 }
 0x225   : > { %1181 = vst.msk [vmem:[#allocation3 + $0x18] sm:$0xff] %vm1177_vm10, %v1136_v48  ;;  %1349 = vrot.lane.b32.xlu2 %v1285_v47, %s1684_s15 }
 0x22b   : > { %v1201_v52 = vld [vmem:[#allocation3 + $0x38] sm:$0xff] }
 0x22c   : > { %v1197_v58 = vld [vmem:[#allocation3 + $0x18] sm:$0xff]  ;;  %1559 = vmatmul.msk.f32.gmra.mxu1 %vm1215_vm11, %v1201_v52 }
 0x22d   : > { %1555 = vmatmul.msk.f32.gmra.mxu0 %vm1215_vm11, %v1197_v58 }
 0x232   : > { %v1297_v61 = vpop.f32.mrf.mxu1 }
 0x23f   : > { %v1324_v49 = vpop.f32.mrf.mxu3 }
 0x240   : > { %v1312_v51 = vpop.f32.mrf.mxu2 }
 0x253   : > { %v1300_v21 = vpop.f32.mrf.mxu1 }
 0x259   : > { %v1288_v15 = vpop.f32.mrf.mxu0 }
 0x25a   : > { %1351 = vrot.lane.b32.xlu0 %v1288_v15, %s1684_s15 }
 0x262   : > { %1357 = vrot.lane.b32.xlu0 %v1297_v61, %s1684_s15 }
 0x269   : > { %v1315_v31 = vpop.f32.mrf.mxu2 }
 0x270   : > { %v1327_v57 = vpop.f32.mrf.mxu3 }
 0x27f   : > { %v1350_v62 = vpop.permute.xlu2 %1349 }
 0x280   : > { %v1397_v1 = vsel %vm320_vm1, %v1783_v2, %v1350_v62 }
 0x281   : > { %1414 = vst.msk [vmem:[%s1793_s12] sm:$0xff] %vm1413_vm12, %v1397_v1 }
 0x289   : > { %v1303_v27 = vpop.f32.mrf.mxu1 }
 0x28a   : > { %v1291_v44 = vpop.f32.mrf.mxu0 }
 0x28b   : > { %1353 = vrot.lane.b32.xlu1 %v1291_v44, %s1684_s15 }
 0x293   : > { %1359 = vrot.lane.b32.xlu1 %v1300_v21, %s1684_s15 }
 0x297   : > { %v1318_v32 = vpop.f32.mrf.mxu2 }
 0x299   : > { %v1330_v35 = vpop.f32.mrf.mxu3 }
 0x29b   : > { %1365 = vrot.lane.b32.xlu1 %v1309_v26, %s1684_s15 }
 0x2a3   : > { %1371 = vrot.lane.b32.xlu1 %v1318_v32, %s1684_s15 }
 0x2a9   : > { %v1306_v2 = vpop.f32.mrf.mxu1 }
 0x2aa   : > { %v1294_v5 = vpop.f32.mrf.mxu0  ;;  %1363 = vrot.lane.b32.xlu0 %v1306_v2, %s1684_s15 }
 0x2ab   : > { %1377 = vrot.lane.b32.xlu1 %v1327_v57, %s1684_s15  ;;  %1355 = vrot.lane.b32.xlu2 %v1294_v5, %s1684_s15 }
 0x2b2   : > { %1369 = vrot.lane.b32.xlu0 %v1315_v31, %s1684_s15 }
 0x2b3   : > { %1361 = vrot.lane.b32.xlu2 %v1303_v27, %s1684_s15 }
 0x2ba   : > { %1375 = vrot.lane.b32.xlu0 %v1324_v49, %s1684_s15 }
 0x2bb   : > { %1367 = vrot.lane.b32.xlu2 %v1312_v51, %s1684_s15 }
 0x2c3   : > { %1373 = vrot.lane.b32.xlu2 %v1321_v24, %s1684_s15 }
 0x2cb   : > { %1379 = vrot.lane.b32.xlu2 %v1330_v35, %s1684_s15 }
 0x2cc   : > { %v1352_v56 = vpop.permute.xlu0 %1351 }
 0x2cd   : > { %v1398_v10 = vsel %vm320_vm1, %v1786_v3, %v1352_v56 }
 0x2ce   : > { %1415 = vst.msk [vmem:[%s1793_s12 + $0x8] sm:$0xff] %vm1413_vm12, %v1398_v10 }
 0x2d4   : > { %v1358_v36 = vpop.permute.xlu0 %1357 }
 0x2d5   : > { %v1401_v12 = vsel %vm320_vm1, %v1815_v9, %v1358_v36 }
 0x2d6   : > { %1418 = vst.msk [vmem:[%s1793_s12 + $0x20] sm:$0xff] %vm1413_vm12, %v1401_v12 }
 0x2fd   : > { %v1354_v39 = vpop.permute.xlu1 %1353 }
 0x2fe   : > { %v1399_v17 = vsel %vm320_vm1, %v1796_v4, %v1354_v39 }
 0x2ff   : > { %1416 = vst.msk [vmem:[%s1793_s12 + $0x10] sm:$0xff] %vm1413_vm12, %v1399_v17 }
 0x305   : > { %v1360_v50 = vpop.permute.xlu1 %1359  ;;  %v1356_v43 = vpop.permute.xlu2 %1355 }
 0x306   : > { %v1402_v3 = vsel %vm320_vm1, %v1822_v11, %v1360_v50  ;;  %v1400_v55 = vsel %vm320_vm1, %v1808_v7, %v1356_v43 }
 0x307   : > { %1419 = vst.msk [vmem:[%s1793_s12 + $0x28] sm:$0xff] %vm1413_vm12, %v1402_v3 }
 0x308   : > { %1417 = vst.msk [vmem:[%s1793_s12 + $0x18] sm:$0xff] %vm1413_vm12, %v1400_v55 }
 0x30d   : > { %v1366_v9 = vpop.permute.xlu1 %1365  ;;  %v1362_v46 = vpop.permute.xlu2 %1361 }
 0x30e   : > { %v1405_v4 = vsel %vm320_vm1, %v1845_v19, %v1366_v9  ;;  %v1403_v30 = vsel %vm320_vm1, %v1829_v13, %v1362_v46 }
 0x30f   : > { %1422 = vst.msk [vmem:[%s1793_s12 + $0x40] sm:$0xff] %vm1413_vm12, %v1405_v4 }
 0x310   : > { %1420 = vst.msk [vmem:[%s1793_s12 + $0x30] sm:$0xff] %vm1413_vm12, %v1403_v30 }
 0x315   : > { %v1372_v7 = vpop.permute.xlu1 %1371  ;;  %v1368_v11 = vpop.permute.xlu2 %1367 }
 0x316   : > { %v1408_v20 = vsel %vm320_vm1, %v1869_v29, %v1372_v7  ;;  %v1406_v54 = vsel %vm320_vm1, %v1853_v22, %v1368_v11 }
 0x317   : > { %1425 = vst.msk [vmem:[%s1793_s12 + $0x58] sm:$0xff] %vm1413_vm12, %v1408_v20 }
 0x318   : > { %1423 = vst.msk [vmem:[%s1793_s12 + $0x48] sm:$0xff] %vm1413_vm12, %v1406_v54 }
 0x31c   : > { %v1364_v13 = vpop.permute.xlu0 %1363 }
 0x31d   : > { %v1404_v19 = vsel %vm320_vm1, %v1837_v16, %v1364_v13  ;;  %v1378_v28 = vpop.permute.xlu1 %1377  ;;  %v1374_v8 = vpop.permute.xlu2 %1373 }
 0x31e   : > { %1421 = vst.msk [vmem:[%s1793_s12 + $0x38] sm:$0xff] %vm1413_vm12, %v1404_v19  ;;  %v1411_v29 = vsel %vm320_vm1, %v1893_v41, %v1378_v28  ;;  %v1409_v22 = vsel %vm320_vm1, %v1877_v33, %v1374_v8 }
 0x31f   : > { %1428 = vst.msk [vmem:[%s1793_s12 + $0x70] sm:$0xff] %vm1413_vm12, %v1411_v29 }
 0x320   : > { %1426 = vst.msk [vmem:[%s1793_s12 + $0x60] sm:$0xff] %vm1413_vm12, %v1409_v22 }
 0x324   : > { %v1370_v59 = vpop.permute.xlu0 %1369 }
 0x325   : > { %v1407_v14 = vsel %vm320_vm1, %v1861_v25, %v1370_v59  ;;  %v1380_v16 = vpop.permute.xlu2 %1379 }
 0x326   : > { %1424 = vst.msk [vmem:[%s1793_s12 + $0x50] sm:$0xff] %vm1413_vm12, %v1407_v14  ;;  %v1412_v53 = vsel %vm320_vm1, %v1900_v45, %v1380_v16 }
 0x327   : > { %1429 = vst.msk [vmem:[%s1793_s12 + $0x78] sm:$0xff] %vm1413_vm12, %v1412_v53 }
 0x32c   : > { %v1376_v41 = vpop.permute.xlu0 %1375 }
 0x32d   : > { %v1410_v33 = vsel %vm320_vm1, %v1885_v37, %v1376_v41 }
 0x32e   : > { %1427 = vst.msk [vmem:[%s1793_s12 + $0x68] sm:$0xff] %vm1413_vm12, %v1410_v33 }
 0x32f PF: > { %s14_s19 = sadd.s32 1, %s1679_s19   ;;  %s2581_s15 = smov %s1671_s17 }
 0x330   : > { %p11_p11 = scmp.ge.s32.totalorder %s14_s19, 6   ;;  %s2582_s16 = smov %s1675_s18 }
 0x331   : > { %s2583_s17 = smov %s2586_s20  ;;  %s2584_s18 = smov %s2590_s21 }
 0x332   :  { %13 = sbr.rel (!%p11_p11) target bundleno = 3 (0x3), region = 89 }

</bundles_post_ra>
